<compile_context>
chip_gen: v7x
topology: tpu7x:2x2x1
jax: 0.10.0
libtpu: 0.0.40
codegen_flags: <defaults>
</compile_context>

<pallas_src>
import jax
import jax.numpy as jnp
from jax.experimental import pallas as pl
from jax.experimental.pallas import tpu as pltpu

NEG_INF = -1e30  # mask value for padded class logits (kept in f32 head, never cast to bf16)
NUM_LAYERS = 3


# ---------------------------------------------------------------------------
# Fused kernel.  grid = (NUM_LAYERS,)  [arbitrary / sequential].
# Per step l:
#   agg = A_gin @ H              (H resident in VMEM scratch, f32 MXU accumulation)
#   z   = ReLU( ReLU(BN(agg @ Wa + ba)) @ Wb + bb )      (GINConv MLP, layer l weights)
#   H  <- z                       (stays in VMEM for layer l+1)
#   pooled[:, l*dim_h:(l+1)*dim_h] = sum_rows(z)          (fused global_add_pool, batch == 0)
# Last step additionally runs: cat-pool @ W1 + b1 -> ReLU -> (dropout eval) -> @ W2 + b2
#                              -> log_softmax -> output (1, c_pad).
# ---------------------------------------------------------------------------
def gin_fused_kernel(a_ref, x_ref,
                     wa_ref, ba_ref, bns_ref, bnsh_ref, wb_ref, bb_ref,
                     w1_ref, b1_ref, w2_ref, b2_ref,
                     o_ref, h_ref, pooled_ref):
    l = pl.program_id(0)
    dim_h = h_ref.shape[1]

    @pl.when(l == 0)
    def _():
        h_ref[...] = x_ref[...]                       # padded input features -> resident H
        pooled_ref[...] = jnp.zeros_like(pooled_ref)

    # GIN aggregation: (A + (1+eps)I) @ H, f32 accumulation on the MXU.
    agg = jnp.dot(a_ref[...], h_ref[...], preferred_element_type=jnp.float32)

    # GINConv MLP: Linear -> BatchNorm1d (eval-mode folded affine) -> ReLU -> Linear -> ReLU.
    z = jnp.dot(agg.astype(jnp.bfloat16), wa_ref[0],
                preferred_element_type=jnp.float32) + ba_ref[0]
    z = jnp.maximum(z * bns_ref[0] + bnsh_ref[0], 0.0)
    z = jnp.dot(z.astype(jnp.bfloat16), wb_ref[0],
                preferred_element_type=jnp.float32) + bb_ref[0]
    z = jnp.maximum(z, 0.0)

    h_ref[...] = z.astype(h_ref.dtype)                # next layer's input, never leaves VMEM

    # Fused global_add_pool (single graph: batch == 0 for every node).
    psum = jnp.sum(z, axis=0, keepdims=True)          # (1, dim_h) f32

    @pl.when(l == 0)
    def _():
        pooled_ref[:, 0:dim_h] = psum

    @pl.when(l == 1)
    def _():
        pooled_ref[:, dim_h:2 * dim_h] = psum

    @pl.when(l == 2)
    def _():
        pooled_ref[:, 2 * dim_h:3 * dim_h] = psum

    # Readout head, only on the last layer step.
    @pl.when(l == pl.num_programs(0) - 1)
    def _():
        g = pooled_ref[...]                                       # (1, 3*dim_h) = cat(h1,h2,h3)
        t = jnp.dot(g, w1_ref[...], preferred_element_type=jnp.float32) + b1_ref[...]
        t = jnp.maximum(t, 0.0)
        # Dropout(p=0.5): identity in eval mode.
        # TODO(synk): training-mode stochastic dropout (pltpu.prng_random_bits) not emitted here.
        logits = jnp.dot(t, w2_ref[...], preferred_element_type=jnp.float32) + b2_ref[...]
        m = jnp.max(logits, axis=1, keepdims=True)                # padded logits carry -1e30 bias
        s = logits - m
        o_ref[...] = s - jnp.log(jnp.sum(jnp.exp(s), axis=1, keepdims=True))


def gin_forward(a_gin, x_pad, params):
    n, f_pad = x_pad.shape
    dim_h = params["wb"].shape[-1]
    c_pad = params["w2"].shape[1]
    assert f_pad == dim_h, "padded input-feature width must equal dim_h for the stacked weights"

    resident = pl.BlockSpec(memory_space=pltpu.MemorySpace.VMEM)     # whole array, loaded once
    layer_mat = pl.BlockSpec((1, dim_h, dim_h), lambda l: (l, 0, 0))  # one layer's matrix per step
    layer_vec = pl.BlockSpec((1, 1, dim_h), lambda l: (l, 0, 0))      # one layer's bias/affine

    return pl.pallas_call(
        gin_fused_kernel,
        out_shape=jax.ShapeDtypeStruct((1, c_pad), jnp.float32),
        grid=(NUM_LAYERS,),
        in_specs=[
            resident,                      # A_gin (N, N) bf16, VMEM resident
            resident,                      # X_pad (N, f_pad) bf16, VMEM resident
            layer_mat, layer_vec,          # Wa, ba
            layer_vec, layer_vec,          # bn_scale, bn_shift
            layer_mat, layer_vec,          # Wb, bb
            resident, resident,            # W1, b1 (head)
            resident, resident,            # W2, b2 (head, padded classes masked)
        ],
        out_specs=pl.BlockSpec((1, c_pad), lambda l: (0, 0)),
        scratch_shapes=[
            pltpu.VMEM((n, dim_h), jnp.bfloat16),     # resident node embeddings H
            pltpu.VMEM((1, 3 * dim_h), jnp.float32),  # concatenated pooled sums
        ],
        compiler_params=pltpu.CompilerParams(dimension_semantics=("arbitrary",)),
    )(a_gin, x_pad,
      params["wa"], params["ba"], params["bn_scale"], params["bn_shift"],
      params["wb"], params["bb"],
      params["w1"], params["b1"], params["w2"], params["b2"])


# ---------------------------------------------------------------------------
# Setup glue (plain JAX): dense GIN adjacency, parameter init, pure-JAX reference.
# ---------------------------------------------------------------------------
def build_gin_adj(edge_index, num_nodes, eps=0.0):
    """Dense GIN aggregation operator: A + (1+eps) * I (neighbor sum + weighted self)."""
    src, dst = edge_index[0], edge_index[1]
    a = jnp.zeros((num_nodes, num_nodes), jnp.float32).at[dst, src].set(1.0)
    return a + (1.0 + eps) * jnp.eye(num_nodes, dtype=jnp.float32)


def make_gin_layer_params(key, f_in, dim_h, f_in_pad):
    k1, k2, k3, k4 = jax.random.split(key, 4)
    wa = jax.random.normal(k1, (f_in, dim_h), jnp.float32) / jnp.sqrt(f_in)
    wa = jnp.pad(wa, ((0, f_in_pad - f_in), (0, 0)))          # zero rows for padded input features
    ba = jax.random.normal(k2, (1, dim_h), jnp.float32) * 0.1
    # BatchNorm1d (eval mode) folded to per-channel affine: y = x * scale + shift
    gamma = jnp.ones((1, dim_h), jnp.float32)
    beta = jnp.zeros((1, dim_h), jnp.float32)
    run_mean = jnp.zeros((1, dim_h), jnp.float32)
    run_var = jnp.ones((1, dim_h), jnp.float32)
    bn_scale = gamma / jnp.sqrt(run_var + 1e-5)
    bn_shift = beta - run_mean * bn_scale
    wb = jax.random.normal(k3, (dim_h, dim_h), jnp.float32) / jnp.sqrt(dim_h)
    bb = jax.random.normal(k4, (1, dim_h), jnp.float32) * 0.1
    return dict(wa=wa.astype(jnp.bfloat16), ba=ba, bn_scale=bn_scale, bn_shift=bn_shift,
                wb=wb.astype(jnp.bfloat16), bb=bb)


def make_head_params(key, dim_h, num_classes, c_pad):
    k1, k2, k3, k4 = jax.random.split(key, 4)
    d3 = 3 * dim_h
    w1 = jax.random.normal(k1, (d3, d3), jnp.float32) * (0.1 / jnp.sqrt(d3))
    b1 = jax.random.normal(k2, (1, d3), jnp.float32) * 0.1
    w2 = jax.random.normal(k3, (d3, num_classes), jnp.float32) * (0.1 / jnp.sqrt(d3))
    b2 = jax.random.normal(k4, (1, num_classes), jnp.float32) * 0.1
    w2 = jnp.pad(w2, ((0, 0), (0, c_pad - num_classes)))      # zero cols for padded classes
    b2 = jnp.concatenate([b2, jnp.full((1, c_pad - num_classes), NEG_INF, jnp.float32)], axis=1)
    return dict(w1=w1, b1=b1, w2=w2, b2=b2)


def stack_layer_params(layers):
    """Stack per-layer params along a leading layer axis so one grid step streams one layer."""
    return {k: jnp.stack([lyr[k] for lyr in layers], axis=0) for k in layers[0]}


def reference_forward(a_gin, x_pad, params):
    """Pure-JAX reference mirroring the kernel's dtypes (bf16 operands, f32 accumulate)."""
    h = x_pad
    pooled = []
    for l in range(NUM_LAYERS):
        agg = jnp.dot(a_gin, h, preferred_element_type=jnp.float32)
        z = jnp.dot(agg.astype(jnp.bfloat16), params["wa"][l],
                    preferred_element_type=jnp.float32) + params["ba"][l]
        z = jnp.maximum(z * params["bn_scale"][l] + params["bn_shift"][l], 0.0)
        z = jnp.dot(z.astype(jnp.bfloat16), params["wb"][l],
                    preferred_element_type=jnp.float32) + params["bb"][l]
        z = jnp.maximum(z, 0.0)
        pooled.append(jnp.sum(z, axis=0, keepdims=True))
        h = z.astype(jnp.bfloat16)
    g = jnp.concatenate(pooled, axis=1)
    t = jnp.maximum(jnp.dot(g, params["w1"], preferred_element_type=jnp.float32) + params["b1"], 0.0)
    logits = jnp.dot(t, params["w2"], preferred_element_type=jnp.float32) + params["b2"]
    m = jnp.max(logits, axis=1, keepdims=True)
    s = logits - m
    return s - jnp.log(jnp.sum(jnp.exp(s), axis=1, keepdims=True))


if __name__ == "__main__":
    # Small, lane-friendly synthetic graph: 256 nodes, 8 input features, hidden 128, 8 classes.
    num_nodes = 256
    num_features = 8
    dim_h = 128
    num_classes = 8
    f_pad = 128   # pad input features to the 128-lane width (== dim_h)
    c_pad = 128   # pad classes to the 128-lane width (masked with -1e30 bias)

    key = jax.random.PRNGKey(0)
    keys = jax.random.split(key, 5)

    x = jax.random.normal(keys[0], (num_nodes, num_features), jnp.float32)
    x_pad = jnp.pad(x, ((0, 0), (0, f_pad - num_features))).astype(jnp.bfloat16)

    # Deterministic ring graph with skip-2 edges (undirected: both directions).
    idx = jnp.arange(num_nodes)
    nbr1 = (idx + 1) % num_nodes
    nbr2 = (idx + 2) % num_nodes
    src = jnp.concatenate([idx, nbr1, idx, nbr2])
    dst = jnp.concatenate([nbr1, idx, nbr2, idx])
    edge_index = jnp.stack([src, dst], axis=0)

    # eps = 0 (GINConv default): entries of A_gin are exactly 0/1/2 -> exact in bf16.
    a_gin = build_gin_adj(edge_index, num_nodes, eps=0.0).astype(jnp.bfloat16)

    layer_params = stack_layer_params([
        make_gin_layer_params(keys[1], num_features, dim_h, f_pad),
        make_gin_layer_params(keys[2], dim_h, dim_h, dim_h),
        make_gin_layer_params(keys[3], dim_h, dim_h, dim_h),
    ])
    params = dict(layer_params, **make_head_params(keys[4], dim_h, num_classes, c_pad))

    out_pad = jax.jit(gin_forward)(a_gin, x_pad, params)
    jax.block_until_ready(out_pad)
    out = out_pad[:, :num_classes]

    ref = reference_forward(a_gin, x_pad, params)[:, :num_classes]

    assert out.shape == (1, num_classes)
    assert bool(jnp.all(jnp.isfinite(out)))
    # log_softmax rows must exp-sum to 1 (padded classes contribute ~0)
    assert bool(jnp.abs(jnp.exp(out).sum() - 1.0) < 1e-3)
    # match the pure-JAX reference (same dtypes; only f32 accumulation order differs)
    tol = 1e-2 * (1.0 + float(jnp.max(jnp.abs(ref))))
    assert bool(jnp.max(jnp.abs(out - ref)) < tol)

    print("KERNEL_OK")
</pallas_src>

<mosaic_0001>
module attributes {stable_mosaic.version = 11 : i64} {
  func.func @gin_fused_kernel(%arg0: i32, %arg1: memref<256x256xbf16, #tpu.memory_space<vmem>>, %arg2: memref<256x128xbf16, #tpu.memory_space<vmem>>, %arg3: memref<1x128x128xbf16, #tpu.memory_space<vmem>>, %arg4: memref<1x1x128xf32, #tpu.memory_space<vmem>>, %arg5: memref<1x1x128xf32, #tpu.memory_space<vmem>>, %arg6: memref<1x1x128xf32, #tpu.memory_space<vmem>>, %arg7: memref<1x128x128xbf16, #tpu.memory_space<vmem>>, %arg8: memref<1x1x128xf32, #tpu.memory_space<vmem>>, %arg9: memref<384x384xf32, #tpu.memory_space<vmem>>, %arg10: memref<1x384xf32, #tpu.memory_space<vmem>>, %arg11: memref<384x128xf32, #tpu.memory_space<vmem>>, %arg12: memref<1x128xf32, #tpu.memory_space<vmem>>, %arg13: memref<1x128xf32, #tpu.memory_space<vmem>>, %arg14: memref<256x128xbf16, #tpu.memory_space<vmem>>, %arg15: memref<1x384xf32, #tpu.memory_space<vmem>>) attributes {dimension_semantics = [#tpu.dimension_semantics<arbitrary>], iteration_bounds = array<i64: 3>, scalar_prefetch = 0 : i64, scratch_operands = 2 : i64, tpu.core_type = #tpu.core_type<tc>, window_params = [{pipeline_mode = #tpu.pipeline_mode<synchronous>, transform_indices = @transform_0, window_bounds = array<i64: 256, 256>}, {pipeline_mode = #tpu.pipeline_mode<synchronous>, transform_indices = @transform_1, window_bounds = array<i64: 256, 128>}, {transform_indices = @transform_2, window_bounds = array<i64: 1, 128, 128>}, {transform_indices = @transform_3, window_bounds = array<i64: 1, 1, 128>}, {transform_indices = @transform_4, window_bounds = array<i64: 1, 1, 128>}, {transform_indices = @transform_5, window_bounds = array<i64: 1, 1, 128>}, {transform_indices = @transform_6, window_bounds = array<i64: 1, 128, 128>}, {transform_indices = @transform_7, window_bounds = array<i64: 1, 1, 128>}, {pipeline_mode = #tpu.pipeline_mode<synchronous>, transform_indices = @transform_8, window_bounds = array<i64: 384, 384>}, {pipeline_mode = #tpu.pipeline_mode<synchronous>, transform_indices = @transform_9, window_bounds = array<i64: 1, 384>}, {pipeline_mode = #tpu.pipeline_mode<synchronous>, transform_indices = @transform_10, window_bounds = array<i64: 384, 128>}, {pipeline_mode = #tpu.pipeline_mode<synchronous>, transform_indices = @transform_11, window_bounds = array<i64: 1, 128>}, {pipeline_mode = #tpu.pipeline_mode<synchronous>, transform_indices = @transform_12, window_bounds = array<i64: 1, 128>}]} {
    %c0_i32 = arith.constant 0 : i32
    %0 = arith.cmpi eq, %arg0, %c0_i32 : i32
    %1 = arith.extui %0 : i1 to i32
    %c0_i32_0 = arith.constant 0 : i32
    %2 = arith.cmpi ne, %1, %c0_i32_0 : i32
    scf.if %2 {
      %c0_35 = arith.constant 0 : index
      %c0_36 = arith.constant 0 : index
      %50 = vector.load %arg2[%c0_35, %c0_36] : memref<256x128xbf16, #tpu.memory_space<vmem>>, vector<256x128xbf16>
      %c0_37 = arith.constant 0 : index
      %c0_38 = arith.constant 0 : index
      %51 = vector.load %arg14[%c0_37, %c0_38] : memref<256x128xbf16, #tpu.memory_space<vmem>>, vector<256x128xbf16>
      tpu.vector_store %arg14[%c0_37, %c0_38], %50 {strides = array<i32>} : memref<256x128xbf16, #tpu.memory_space<vmem>>, vector<256x128xbf16>,
      %cst_39 = arith.constant 0.000000e+00 : f32
      %52 = vector.broadcast %cst_39 : f32 to vector<1x384xf32>
      %c0_40 = arith.constant 0 : index
      %c0_41 = arith.constant 0 : index
      %53 = vector.load %arg15[%c0_40, %c0_41] : memref<1x384xf32, #tpu.memory_space<vmem>>, vector<1x384xf32>
      tpu.vector_store %arg15[%c0_40, %c0_41], %52 {strides = array<i32>} : memref<1x384xf32, #tpu.memory_space<vmem>>, vector<1x384xf32>,
    } else {
    }
    %c0 = arith.constant 0 : index
    %c0_1 = arith.constant 0 : index
    %3 = vector.load %arg1[%c0, %c0_1] : memref<256x256xbf16, #tpu.memory_space<vmem>>, vector<256x256xbf16>
    %c0_2 = arith.constant 0 : index
    %c0_3 = arith.constant 0 : index
    %4 = vector.load %arg14[%c0_2, %c0_3] : memref<256x128xbf16, #tpu.memory_space<vmem>>, vector<256x128xbf16>
    %cst = arith.constant dense<0.000000e+00> : vector<256x128xf32>
    %5 = tpu.matmul %3, %4, %cst {dimension_numbers = #tpu.dot_dimension_numbers<[1], [0], [0], [1], [0, 0, 1, 1], [], []>} : vector<256x256xbf16>, vector<256x128xbf16>, vector<256x128xf32> -> vector<256x128xf32>
    %6 = arith.truncf %5 : vector<256x128xf32> to vector<256x128xbf16>
    %c0_4 = arith.constant 0 : index
    %c0_5 = arith.constant 0 : index
    %c0_6 = arith.constant 0 : index
    %7 = vector.load %arg3[%c0_4, %c0_5, %c0_6] : memref<1x128x128xbf16, #tpu.memory_space<vmem>>, vector<1x128x128xbf16>
    %8 = vector.shape_cast %7 : vector<1x128x128xbf16> to vector<128x128xbf16>
    %cst_7 = arith.constant dense<0.000000e+00> : vector<256x128xf32>
    %9 = tpu.matmul %6, %8, %cst_7 {dimension_numbers = #tpu.dot_dimension_numbers<[1], [0], [0], [1], [0, 0, 1, 1], [], []>} : vector<256x128xbf16>, vector<128x128xbf16>, vector<256x128xf32> -> vector<256x128xf32>
    %c0_8 = arith.constant 0 : index
    %c0_9 = arith.constant 0 : index
    %c0_10 = arith.constant 0 : index
    %10 = vector.load %arg4[%c0_8, %c0_9, %c0_10] : memref<1x1x128xf32, #tpu.memory_space<vmem>>, vector<1x1x128xf32>
    %11 = vector.shape_cast %10 : vector<1x1x128xf32> to vector<1x128xf32>
    %12 = vector.broadcast %11 : vector<1x128xf32> to vector<256x128xf32>
    %13 = arith.addf %9, %12 : vector<256x128xf32>
    %c0_11 = arith.constant 0 : index
    %c0_12 = arith.constant 0 : index
    %c0_13 = arith.constant 0 : index
    %14 = vector.load %arg5[%c0_11, %c0_12, %c0_13] : memref<1x1x128xf32, #tpu.memory_space<vmem>>, vector<1x1x128xf32>
    %15 = vector.shape_cast %14 : vector<1x1x128xf32> to vector<1x128xf32>
    %16 = vector.broadcast %15 : vector<1x128xf32> to vector<256x128xf32>
    %17 = arith.mulf %13, %16 : vector<256x128xf32>
    %c0_14 = arith.constant 0 : index
    %c0_15 = arith.constant 0 : index
    %c0_16 = arith.constant 0 : index
    %18 = vector.load %arg6[%c0_14, %c0_15, %c0_16] : memref<1x1x128xf32, #tpu.memory_space<vmem>>, vector<1x1x128xf32>
    %19 = vector.shape_cast %18 : vector<1x1x128xf32> to vector<1x128xf32>
    %20 = vector.broadcast %19 : vector<1x128xf32> to vector<256x128xf32>
    %21 = arith.addf %17, %20 : vector<256x128xf32>
    %cst_17 = arith.constant 0.000000e+00 : f32
    %22 = vector.broadcast %cst_17 : f32 to vector<256x128xf32>
    %23 = arith.maximumf %21, %22 : vector<256x128xf32>
    %24 = arith.truncf %23 : vector<256x128xf32> to vector<256x128xbf16>
    %c0_18 = arith.constant 0 : index
    %c0_19 = arith.constant 0 : index
    %c0_20 = arith.constant 0 : index
    %25 = vector.load %arg7[%c0_18, %c0_19, %c0_20] : memref<1x128x128xbf16, #tpu.memory_space<vmem>>, vector<1x128x128xbf16>
    %26 = vector.shape_cast %25 : vector<1x128x128xbf16> to vector<128x128xbf16>
    %cst_21 = arith.constant dense<0.000000e+00> : vector<256x128xf32>
    %27 = tpu.matmul %24, %26, %cst_21 {dimension_numbers = #tpu.dot_dimension_numbers<[1], [0], [0], [1], [0, 0, 1, 1], [], []>} : vector<256x128xbf16>, vector<128x128xbf16>, vector<256x128xf32> -> vector<256x128xf32>
    %c0_22 = arith.constant 0 : index
    %c0_23 = arith.constant 0 : index
    %c0_24 = arith.constant 0 : index
    %28 = vector.load %arg8[%c0_22, %c0_23, %c0_24] : memref<1x1x128xf32, #tpu.memory_space<vmem>>, vector<1x1x128xf32>
    %29 = vector.shape_cast %28 : vector<1x1x128xf32> to vector<1x128xf32>
    %30 = vector.broadcast %29 : vector<1x128xf32> to vector<256x128xf32>
    %31 = arith.addf %27, %30 : vector<256x128xf32>
    %cst_25 = arith.constant 0.000000e+00 : f32
    %32 = vector.broadcast %cst_25 : f32 to vector<256x128xf32>
    %33 = arith.maximumf %31, %32 : vector<256x128xf32>
    %34 = arith.truncf %33 : vector<256x128xf32> to vector<256x128xbf16>
    %c0_26 = arith.constant 0 : index
    %c0_27 = arith.constant 0 : index
    %35 = vector.load %arg14[%c0_26, %c0_27] : memref<256x128xbf16, #tpu.memory_space<vmem>>, vector<256x128xbf16>
    tpu.vector_store %arg14[%c0_26, %c0_27], %34 {strides = array<i32>} : memref<256x128xbf16, #tpu.memory_space<vmem>>, vector<256x128xbf16>,
    %cst_28 = arith.constant dense<0.000000e+00> : vector<128xf32>
    %36 = vector.multi_reduction <add>, %33, %cst_28 [0] : vector<256x128xf32> to vector<128xf32>
    %37 = vector.shape_cast %36 : vector<128xf32> to vector<1x128xf32>
    %c0_i32_29 = arith.constant 0 : i32
    %38 = arith.cmpi eq, %arg0, %c0_i32_29 : i32
    %39 = arith.extui %38 : i1 to i32
    %c0_i32_30 = arith.constant 0 : i32
    %40 = arith.cmpi ne, %39, %c0_i32_30 : i32
    scf.if %40 {
      %c0_35 = arith.constant 0 : index
      %c0_36 = arith.constant 0 : index
      %50 = vector.load %arg15[%c0_35, %c0_36] : memref<1x384xf32, #tpu.memory_space<vmem>>, vector<1x128xf32>
      tpu.vector_store %arg15[%c0_35, %c0_36], %37 {strides = array<i32>} : memref<1x384xf32, #tpu.memory_space<vmem>>, vector<1x128xf32>,
    } else {
    }
    %c1_i32 = arith.constant 1 : i32
    %41 = arith.cmpi eq, %arg0, %c1_i32 : i32
    %42 = arith.extui %41 : i1 to i32
    %c0_i32_31 = arith.constant 0 : i32
    %43 = arith.cmpi ne, %42, %c0_i32_31 : i32
    scf.if %43 {
      %c0_35 = arith.constant 0 : index
      %c128 = arith.constant 128 : index
      %50 = vector.load %arg15[%c0_35, %c128] : memref<1x384xf32, #tpu.memory_space<vmem>>, vector<1x128xf32>
      tpu.vector_store %arg15[%c0_35, %c128], %37 {strides = array<i32>} : memref<1x384xf32, #tpu.memory_space<vmem>>, vector<1x128xf32>,
    } else {
    }
    %c2_i32 = arith.constant 2 : i32
    %44 = arith.cmpi eq, %arg0, %c2_i32 : i32
    %45 = arith.extui %44 : i1 to i32
    %c0_i32_32 = arith.constant 0 : i32
    %46 = arith.cmpi ne, %45, %c0_i32_32 : i32
    scf.if %46 {
      %c0_35 = arith.constant 0 : index
      %c256 = arith.constant 256 : index
      %50 = vector.load %arg15[%c0_35, %c256] : memref<1x384xf32, #tpu.memory_space<vmem>>, vector<1x128xf32>
      tpu.vector_store %arg15[%c0_35, %c256], %37 {strides = array<i32>} : memref<1x384xf32, #tpu.memory_space<vmem>>, vector<1x128xf32>,
    } else {
    }
    %c2_i32_33 = arith.constant 2 : i32
    %47 = arith.cmpi eq, %arg0, %c2_i32_33 : i32
    %48 = arith.extui %47 : i1 to i32
    %c0_i32_34 = arith.constant 0 : i32
    %49 = arith.cmpi ne, %48, %c0_i32_34 : i32
    scf.if %49 {
      %c0_35 = arith.constant 0 : index
      %c0_36 = arith.constant 0 : index
      %50 = vector.load %arg15[%c0_35, %c0_36] : memref<1x384xf32, #tpu.memory_space<vmem>>, vector<1x384xf32>
      %c0_37 = arith.constant 0 : index
      %c0_38 = arith.constant 0 : index
      %51 = vector.load %arg9[%c0_37, %c0_38] : memref<384x384xf32, #tpu.memory_space<vmem>>, vector<384x384xf32>
      %cst_39 = arith.constant dense<0.000000e+00> : vector<1x384xf32>
      %52 = tpu.matmul %50, %51, %cst_39 {dimension_numbers = #tpu.dot_dimension_numbers<[1], [0], [0], [1], [0, 0, 1, 1], [], []>} : vector<1x384xf32>, vector<384x384xf32>, vector<1x384xf32> -> vector<1x384xf32>
      %c0_40 = arith.constant 0 : index
      %c0_41 = arith.constant 0 : index
      %53 = vector.load %arg10[%c0_40, %c0_41] : memref<1x384xf32, #tpu.memory_space<vmem>>, vector<1x384xf32>
      %54 = arith.addf %52, %53 : vector<1x384xf32>
      %cst_42 = arith.constant 0.000000e+00 : f32
      %55 = vector.broadcast %cst_42 : f32 to vector<1x384xf32>
      %56 = arith.maximumf %54, %55 : vector<1x384xf32>
      %c0_43 = arith.constant 0 : index
      %c0_44 = arith.constant 0 : index
      %57 = vector.load %arg11[%c0_43, %c0_44] : memref<384x128xf32, #tpu.memory_space<vmem>>, vector<384x128xf32>
      %cst_45 = arith.constant dense<0.000000e+00> : vector<1x128xf32>
      %58 = tpu.matmul %56, %57, %cst_45 {dimension_numbers = #tpu.dot_dimension_numbers<[1], [0], [0], [1], [0, 0, 1, 1], [], []>} : vector<1x384xf32>, vector<384x128xf32>, vector<1x128xf32> -> vector<1x128xf32>
      %c0_46 = arith.constant 0 : index
      %c0_47 = arith.constant 0 : index
      %59 = vector.load %arg12[%c0_46, %c0_47] : memref<1x128xf32, #tpu.memory_space<vmem>>, vector<1x128xf32>
      %60 = arith.addf %58, %59 : vector<1x128xf32>
      %cst_48 = arith.constant dense<0xFF800000> : vector<1xf32>
      %61 = vector.multi_reduction <maximumf>, %60, %cst_48 [1] : vector<1x128xf32> to vector<1xf32>
      %62 = vector.shape_cast %61 : vector<1xf32> to vector<1x1xf32>
      %63 = vector.broadcast %62 : vector<1x1xf32> to vector<1x128xf32>
      %64 = arith.subf %60, %63 : vector<1x128xf32>
      %65 = math.exp %64 : vector<1x128xf32>
      %cst_49 = arith.constant dense<0.000000e+00> : vector<1xf32>
      %66 = vector.multi_reduction <add>, %65, %cst_49 [1] : vector<1x128xf32> to vector<1xf32>
      %67 = vector.shape_cast %66 : vector<1xf32> to vector<1x1xf32>
      %68 = math.log %67 : vector<1x1xf32>
      %69 = vector.broadcast %68 : vector<1x1xf32> to vector<1x128xf32>
      %70 = arith.subf %64, %69 : vector<1x128xf32>
      %c0_50 = arith.constant 0 : index
      %c0_51 = arith.constant 0 : index
      %71 = vector.load %arg13[%c0_50, %c0_51] : memref<1x128xf32, #tpu.memory_space<vmem>>, vector<1x128xf32>
      tpu.vector_store %arg13[%c0_50, %c0_51], %70 {strides = array<i32>} : memref<1x128xf32, #tpu.memory_space<vmem>>, vector<1x128xf32>,
    } else {
    }
    return
  }
  func.func @transform_0(%arg0: i32) -> (i32, i32) {
    %c0_i32 = arith.constant 0 : i32
    %c0_i32_0 = arith.constant 0 : i32
    %c0_i32_1 = arith.constant 0 : i32
    return %c0_i32, %c0_i32_0 : i32, i32
  }
  func.func @transform_1(%arg0: i32) -> (i32, i32) {
    %c0_i32 = arith.constant 0 : i32
    %c0_i32_0 = arith.constant 0 : i32
    %c0_i32_1 = arith.constant 0 : i32
    return %c0_i32, %c0_i32_0 : i32, i32
  }
  func.func @transform_2(%arg0: i32) -> (i32, i32, i32) {
    %c0_i32 = arith.constant 0 : i32
    %c0_i32_0 = arith.constant 0 : i32
    %c0_i32_1 = arith.constant 0 : i32
    return %arg0, %c0_i32, %c0_i32_0 : i32, i32, i32
  }
  func.func @transform_3(%arg0: i32) -> (i32, i32, i32) {
    %c0_i32 = arith.constant 0 : i32
    %c0_i32_0 = arith.constant 0 : i32
    %c0_i32_1 = arith.constant 0 : i32
    return %arg0, %c0_i32, %c0_i32_0 : i32, i32, i32
  }
  func.func @transform_4(%arg0: i32) -> (i32, i32, i32) {
    %c0_i32 = arith.constant 0 : i32
    %c0_i32_0 = arith.constant 0 : i32
    %c0_i32_1 = arith.constant 0 : i32
    return %arg0, %c0_i32, %c0_i32_0 : i32, i32, i32
  }
  func.func @transform_5(%arg0: i32) -> (i32, i32, i32) {
    %c0_i32 = arith.constant 0 : i32
    %c0_i32_0 = arith.constant 0 : i32
    %c0_i32_1 = arith.constant 0 : i32
    return %arg0, %c0_i32, %c0_i32_0 : i32, i32, i32
  }
  func.func @transform_6(%arg0: i32) -> (i32, i32, i32) {
    %c0_i32 = arith.constant 0 : i32
    %c0_i32_0 = arith.constant 0 : i32
    %c0_i32_1 = arith.constant 0 : i32
    return %arg0, %c0_i32, %c0_i32_0 : i32, i32, i32
  }
  func.func @transform_7(%arg0: i32) -> (i32, i32, i32) {
    %c0_i32 = arith.constant 0 : i32
    %c0_i32_0 = arith.constant 0 : i32
    %c0_i32_1 = arith.constant 0 : i32
    return %arg0, %c0_i32, %c0_i32_0 : i32, i32, i32
  }
  func.func @transform_8(%arg0: i32) -> (i32, i32) {
    %c0_i32 = arith.constant 0 : i32
    %c0_i32_0 = arith.constant 0 : i32
    %c0_i32_1 = arith.constant 0 : i32
    return %c0_i32, %c0_i32_0 : i32, i32
  }
  func.func @transform_9(%arg0: i32) -> (i32, i32) {
    %c0_i32 = arith.constant 0 : i32
    %c0_i32_0 = arith.constant 0 : i32
    %c0_i32_1 = arith.constant 0 : i32
    return %c0_i32, %c0_i32_0 : i32, i32
  }
  func.func @transform_10(%arg0: i32) -> (i32, i32) {
    %c0_i32 = arith.constant 0 : i32
    %c0_i32_0 = arith.constant 0 : i32
    %c0_i32_1 = arith.constant 0 : i32
    return %c0_i32, %c0_i32_0 : i32, i32
  }
  func.func @transform_11(%arg0: i32) -> (i32, i32) {
    %c0_i32 = arith.constant 0 : i32
    %c0_i32_0 = arith.constant 0 : i32
    %c0_i32_1 = arith.constant 0 : i32
    return %c0_i32, %c0_i32_0 : i32, i32
  }
  func.func @transform_12(%arg0: i32) -> (i32, i32) {
    %c0_i32 = arith.constant 0 : i32
    %c0_i32_0 = arith.constant 0 : i32
    %c0_i32_1 = arith.constant 0 : i32
    return %c0_i32, %c0_i32_0 : i32, i32
  }
}

</mosaic_0001>

<bundles_post_ra>
// kernel: gin_forward.1
= control target key start
LH: loop header
LB: loop body
LE: loop exit
PB: predicated region body
PF: predicated region fallthrough
CT: control target
= control target key end

     0   :  { %s4539_s0 = inlined_call_operand.hbm [shape: bf16[256,256], index: 0, kind: input, shape index: {}]   ;;  %s4540_s1 = inlined_call_operand.hbm [shape: bf16[256,128], index: 1, kind: input, shape index: {}]   ;;  %s4541_s2 = inlined_call_operand.hbm [shape: bf16[3,128,128], index: 2, kind: input, shape index: {}]   ;;  %s4542_s3 = inlined_call_operand.vmem [shape: f32[3,1,128], index: 3, kind: input, shape index: {}]   ;;  %s4543_s4 = inlined_call_operand.vmem [shape: f32[3,1,128], index: 4, kind: input, shape index: {}]   ;;  %s4544_s5 = inlined_call_operand.vmem [shape: f32[3,1,128], index: 5, kind: input, shape index: {}]   ;;  %s4545_s6 = inlined_call_operand.hbm [shape: bf16[3,128,128], index: 6, kind: input, shape index: {}]   ;;  %s4546_s7 = inlined_call_operand.vmem [shape: f32[3,1,128], index: 7, kind: input, shape index: {}]   ;;  %s4547_s8 = inlined_call_operand.hbm [shape: f32[384,384], index: 8, kind: input, shape index: {}]   ;;  %s4548_s9 = inlined_call_operand.hbm [shape: f32[1,384], index: 9, kind: input, shape index: {}]   ;;  %s4549_s10 = inlined_call_operand.hbm [shape: f32[384,128], index: 10, kind: input, shape index: {}]   ;;  %s4550_s11 = inlined_call_operand.vmem [shape: f32[1,128], index: 11, kind: input, shape index: {}]   ;;  %s4551_s12 = inlined_call_operand.hbm [shape: f32[1,128], index: 12, kind: output, shape index: {}]  }
   0x1   :  { %4571 = sst [smem:[#allocation25_spill]] %s4539_s0 }
   0x2   :  { %4572 = sst [smem:[#allocation26_spill]] %s4540_s1 }
   0x3   :  { %4573 = sst [smem:[#allocation27_spill]] %s4541_s2 }
   0x4   :  { %4574 = sst [smem:[#allocation28_spill]] %s4542_s3 }
   0x5   :  { %4575 = sst [smem:[#allocation29_spill]] %s4543_s4 }
   0x6   :  { %4576 = sst [smem:[#allocation30_spill]] %s4544_s5 }
   0x7   :  { %4577 = sst [smem:[#allocation31_spill]] %s4546_s7 }
   0x8   :  { %4578 = sst [smem:[#allocation32_spill]] %s4548_s9 }
   0x9   :  { %4579 = sst [smem:[#allocation33_spill]] %s4550_s11 }
   0xa   :  { %4580 = sst [smem:[#allocation34_spill]] %s4551_s12 }
   0xb   :  { %17 = vsyncpa [#allocation5], 0 }
   0xc   :  { %18 = vsyncpa [#allocation8], 0 }
   0xd   :  { %19 = vsyncpa [#allocation13], 0 }
   0xe   :  { %20 = vsyncpa [#allocation6], 0  ;;  %s3966_s21 = smov 0   ;;  %s3968_s22 = smov 0  }
   0xf   :  { %s3970_s23 = smov 0   ;;  %s3972_s24 = smov 0  }
  0x10 LB: > { %4581 = sst [smem:[#allocation22_spill]] %s3877_s23  ;;  %s3985_s25 = sadd.s32 4294967295, %s3881_s24   ;;  %s3881_s24 = sphi %s3972_s24, %s4624_s24   ;;  %s3877_s23 = sphi %s3970_s23, %s4626_s23   ;;  %s3873_s22 = sphi %s3968_s22, %s4628_s22   ;;  %s3869_s21 = sphi %s3966_s21, %s4627_s21  }
  0x11   : > { %p88_p0 = scmp.ne.s32.totalorder %s3873_s22, %s3869_s21  ;;  %p4552_p1 = scmp.eq.s32.totalorder %s3985_s25, 0 }
  0x12   : > { %p2664_p2 = scmp.ge.s32.totalorder %s3881_s24, 1  ;;  %p334_p3 = scmp.lt.s32.totalorder %s3881_s24, 4 }
  0x13   : > { %p3994_p5 = por %p4552_p1, %p88_p0  ;;  %s3883_s28 = smov [#allocation4]  }
  0x14   : > { %p3998_p6 = pnand %p2664_p2, %p334_p3  ;;  %s346_s29 = sshll.u32 %s3883_s28, 4  ;;  %s347_s29 = int_to_ptr.vmem [resolvable:$true] %s346_s29 }
  0x15   : > { %s4582_s26 = scalar_select %p3994_p5, 1, 0 }
  0x16   : > { %s4583_s27 = scalar_select %p3998_p6, 1, 0 }
  0x17   : > { %p3433_p7 = pneg %p3998_p6  ;;  %s3884_s13 = smov [#allocation7]  }
  0x18   : > { %s359_s14 = sshll.u32 %s3884_s13, 4  ;;  %s4585_s0 = sld [smem:[#allocation25_spill]]  ;;  %s4010_s14 = int_to_ptr.vmem [resolvable:$true] %s359_s14 }
  0x19   : > { %p4006_p8 = pnand %p3433_p7, %p4552_p1 }
  0x1b   : > { %s4584_s30 = scalar_select %p4006_p8, 1, 0 }
  0x1c   : > { %p4020_p10 = pneg %p4006_p8 }
  0x1e   : > { %s3601_s17 = scalar_lea.hbm %s4585_s0, 4096 }
  0x1f   : > { %p3602_p9 = scmp.ne.s32.totalorder %s4585_s0, %s3601_s17  ;;  %p3608_p13 = scmp.lt.u32.totalorder %s3601_s17, %s4585_s0 }
  0x21   : > { %p3604_p11 = pnand %p4020_p10, %p3602_p9 }
  0x23   : > { %p3605_p12 = pneg %p3604_p11 }
  0x25   : > { %p3610_p0 = pnand %p3608_p13, %p3605_p12 }
  0x27   : > { %3613 = shalt.err (!%p3610_p0)
}
  0x28   : > { %s3614_s13 = scalar_lea.vmem %s347_s29, 4096  ;;  %p3622_p4 = scmp.lt.s32.totalorder %s347_s29, %s347_s29 }
  0x29   : > { %p3615_p2 = scmp.ne.s32.totalorder %s347_s29, %s3614_s13  ;;  %p3623_p1 = scmp.lt.s32.totalorder %s3614_s13, %s3614_s13 }
  0x2b   : > { %p3617_p3 = pnand %p3615_p2, %p4020_p10  ;;  %p3624_p5 = por %p3623_p1, %p3622_p4 }
  0x2d   : > { %p3618_p7 = pneg %p3617_p3 }
  0x2f   : > { %p3625_p6 = pnand %p3624_p5, %p3618_p7 }
  0x31   : > { %3628 = shalt.err (!%p3625_p6)
}
  0x32   : > { %s4556_s15 = smov 128   ;;  %s4557_s16 = smov 8  }
  0x33   : > { %3436 = dma.hbm_to_vmem [thread:$0]  (!%p4006_p8), %s4585_s0, 4096, %s347_s29, [#allocation5], %s4556_s15, %s4556_s15, %s4557_s16  }
  0x34   : > { %s4587_s1 = sld [smem:[#allocation26_spill]] }
  0x3a   : > { %s3629_s28 = scalar_lea.hbm %s4587_s1, 2048 }
  0x3b   : > { %p3630_p1 = scmp.ne.s32.totalorder %s4587_s1, %s3629_s28  ;;  %p3636_p6 = scmp.lt.u32.totalorder %s3629_s28, %s4587_s1 }
  0x3d   : > { %p3632_p4 = pnand %p3630_p1, %p4020_p10 }
  0x3f   : > { %p3633_p5 = pneg %p3632_p4 }
  0x41   : > { %p3638_p9 = pnand %p3636_p6, %p3633_p5 }
  0x43   : > { %3641 = shalt.err (!%p3638_p9)
}
  0x44   : > { %s3642_s29 = scalar_lea.vmem %s4010_s14, 2048  ;;  %p3650_p0 = scmp.lt.s32.totalorder %s4010_s14, %s4010_s14 }
  0x45   : > { %p3643_p11 = scmp.ne.s32.totalorder %s4010_s14, %s3642_s29  ;;  %p3651_p2 = scmp.lt.s32.totalorder %s3642_s29, %s3642_s29 }
  0x47   : > { %p3645_p12 = pnand %p3643_p11, %p4020_p10  ;;  %p3652_p3 = por %p3651_p2, %p3650_p0 }
  0x49   : > { %p3646_p13 = pneg %p3645_p12 }
  0x4b   : > { %p3653_p7 = pnand %p3652_p3, %p3646_p13 }
  0x4d   : > { %3656 = shalt.err (!%p3653_p7)
}
  0x4e   : > { %s4559_s12 = smov 64   ;;  %s4561_s7 = smov 4  }
  0x4f   : > { %3439 = dma.hbm_to_vmem [thread:$0]  (!%p4006_p8), %s4587_s1, 2048, %s4010_s14, [#allocation8], %s4559_s12, %s4559_s12, %s4561_s7  }
  0x50   : > { %s3889_s18 = smov [#allocation12]   ;;  %s4066_s21 = sadd.s32 1, %s3881_s24  }
  0x51   : > { %s386_s19 = sshll.u32 %s3889_s18, 4  ;;  %4588 = sst [smem:[#allocation23_spill]] %s4066_s21  ;;  %s387_s19 = int_to_ptr.vmem [resolvable:$true] %s386_s19 }
  0x52   : > { %s4589_s9 = sld [smem:[#allocation32_spill]] }
  0x58   : > { %s3657_s29 = scalar_lea.hbm %s4589_s9, 48 }
  0x59   : > { %p3658_p1 = scmp.ne.s32.totalorder %s4589_s9, %s3657_s29  ;;  %p3664_p6 = scmp.lt.u32.totalorder %s3657_s29, %s4589_s9 }
  0x5b   : > { %p3660_p4 = pnand %p3658_p1, %p4020_p10 }
  0x5d   : > { %p3661_p5 = pneg %p3660_p4 }
  0x5f   : > { %p3666_p9 = pnand %p3664_p6, %p3661_p5 }
  0x61   : > { %3669 = shalt.err (!%p3666_p9)
}
  0x62   : > { %s3670_s14 = scalar_lea.vmem %s387_s19, 48  ;;  %s3677_s11 = scalar_lea.vmem %s387_s19, 64 }
  0x63   : > { %p3671_p11 = scmp.ne.s32.totalorder %s387_s19, %s3670_s14  ;;  %p3678_p0 = scmp.lt.s32.totalorder %s387_s19, %s387_s19 }
  0x64   : > { %p3679_p2 = scmp.lt.s32.totalorder %s3677_s11, %s3670_s14 }
  0x65   : > { %p3673_p12 = pnand %p3671_p11, %p4020_p10 }
  0x66   : > { %p3680_p3 = por %p3679_p2, %p3678_p0 }
  0x67   : > { %p3674_p13 = pneg %p3673_p12 }
  0x69   : > { %p3681_p7 = pnand %p3680_p3, %p3674_p13 }
  0x6b   : > { %3684 = shalt.err (!%p3681_p7)
}
  0x6c   : > { %3445 = dma.hbm_to_vmem [thread:$0]  (!%p4006_p8), %s4589_s9, 48, %s387_s19, [#allocation13]  }
  0x6d   : > { %s72_s0 = ssub.s32 %s3881_s24, %s4066_s21  ;;  %s75_s5 = sadd.s32 1, %s3877_s23 }
  0x6e   : > { %p73_p1 = scmp.eq.s32.totalorder %s72_s0, 0  ;;  %p82_p4 = scmp.ne.s32.totalorder %s3877_s23, %s3873_s22 }
  0x6f   : > { %p83_p5 = scmp.eq.s32.totalorder %s3881_s24, 0  ;;  %p3461_p6 = scmp.lt.s32.totalorder %s3881_s24, 3 }
  0x70   : > { %s4094_s17 = scalar_select %p73_p1, %s3877_s23, %s75_s5  }
  0x71   : > { %p84_p9 = por %p83_p5, %p82_p4  ;;  %s413_s18 = sand.u32 1, %s3881_s24  }
  0x72   : > { %4590 = sst [smem:[#allocation24_spill]] %s4094_s17  ;;  %s415_s28 = sand.u32 1, %s3877_s23  }
  0x73   : > { %s4098_s13 = sshll.u32 %s415_s28, 6  ;;  %s4558_s29 = sshll.u32 %s3881_s24, 10 }
  0x74   : > { %s4591_s2 = sld [smem:[#allocation27_spill]]  ;;  %s417_s15 = scalar_lea.vmem [#allocation9], %s4098_s13 }
  0x75   : > { %s424_s16 = sshll.u32 %s417_s15, 4  ;;  %p4109_p11 = pnand %p3461_p6, %p84_p9  ;;  %s4113_s16 = int_to_ptr.vmem [resolvable:$true] %s424_s16 }
  0x76   : > { %s3890_s5 = smov [#allocation11]   ;;  %s4117_s14 = scalar_lea.sflag [#allocation5], %s413_s18 }
  0x77   : > { %s4592_s0 = scalar_select %p4109_p11, 1, 0 }
  0x78   : > { %s4115_s28 = sshll.u32 %s3890_s5, 4  ;;  %p4565_p13 = pneg %p4109_p11  ;;  %s373_s28 = int_to_ptr.vmem [resolvable:$true] %s4115_s28 }
  0x7a   : > { %s4106_s19 = scalar_lea.hbm %s4591_s2, %s4558_s29  ;;  %s3690_s12 = scalar_lea.hbm %s4591_s2, 3072 }
  0x7b   : > { %s3685_s11 = scalar_lea.hbm %s4106_s19, 1024  ;;  %p3691_p3 = scmp.lt.u32.totalorder %s4106_s19, %s4591_s2 }
  0x7c   : > { %p3686_p12 = scmp.ne.s32.totalorder %s4106_s19, %s3685_s11  ;;  %p3692_p7 = scmp.lt.u32.totalorder %s3690_s12, %s3685_s11 }
  0x7d   : > { %p3694_p4 = scmp.lt.u32.totalorder %s3685_s11, %s4106_s19 }
  0x7e   : > { %p3688_p0 = pnand %p4565_p13, %p3686_p12  ;;  %p3693_p1 = por %p3692_p7, %p3691_p3 }
  0x80   : > { %p3689_p2 = pneg %p3688_p0  ;;  %p3695_p5 = por %p3694_p4, %p3693_p1 }
  0x82   : > { %p3696_p6 = pnand %p3695_p5, %p3689_p2 }
  0x84   : > { %3699 = shalt.err (!%p3696_p6)
}
  0x85   : > { %s3700_s18 = scalar_lea.vmem %s4113_s16, 1024  ;;  %s3891_s29 = smov [#allocation9]  }
  0x86   : > { %p3701_p9 = scmp.ne.s32.totalorder %s4113_s16, %s3700_s18  ;;  %s3705_s5 = sshll.u32 %s3891_s29, 4  ;;  %s3706_s5 = int_to_ptr.vmem [resolvable:$false] %s3705_s5 }
  0x87   : > { %s3707_s1 = scalar_lea.vmem %s3706_s5, 2048  ;;  %p3708_p8 = scmp.lt.s32.totalorder %s4113_s16, %s3706_s5 }
  0x88   : > { %p3703_p12 = pnand %p3701_p9, %p4565_p13  ;;  %p3709_p3 = scmp.lt.s32.totalorder %s3707_s1, %s3700_s18 }
  0x8a   : > { %p3704_p0 = pneg %p3703_p12  ;;  %p3710_p7 = por %p3709_p3, %p3708_p8 }
  0x8c   : > { %p3711_p1 = pnand %p3710_p7, %p3704_p0 }
  0x8e   : > { %3714 = shalt.err (!%p3711_p1)
}
  0x8f   : > { %s4593_s12 = smov 4   ;;  %s4594_s7 = smov 64  }
  0x90   : > { %3452 = dma.hbm_to_vmem [thread:$0]  (!%p4109_p11), %s4106_s19, 1024, %s4113_s16, %s4117_s14, %s4594_s7, %s4594_s7, %s4593_s12  }
  0x91   : > { %s3715_s29 = scalar_lea.hbm %s4547_s8, 18432 }
  0x92   : > { %p3716_p8 = scmp.ne.s32.totalorder %s4547_s8, %s3715_s29  ;;  %p3722_p5 = scmp.lt.u32.totalorder %s3715_s29, %s4547_s8 }
  0x94   : > { %p3718_p2 = pnand %p3716_p8, %p4020_p10 }
  0x96   : > { %p3719_p4 = pneg %p3718_p2 }
  0x98   : > { %p3724_p6 = pnand %p3722_p5, %p3719_p4 }
  0x9a   : > { %3727 = shalt.err (!%p3724_p6)
}
  0x9b   : > { %s3728_s9 = scalar_lea.vmem %s373_s28, 18432  ;;  %p3736_p3 = scmp.lt.s32.totalorder %s373_s28, %s373_s28 }
  0x9c   : > { %p3729_p9 = scmp.ne.s32.totalorder %s373_s28, %s3728_s9  ;;  %p3737_p7 = scmp.lt.s32.totalorder %s3728_s9, %s3728_s9 }
  0x9e   : > { %p3731_p12 = pnand %p3729_p9, %p4020_p10  ;;  %p3738_p1 = por %p3737_p7, %p3736_p3 }
  0xa0   : > { %p3732_p0 = pneg %p3731_p12 }
  0xa2   : > { %p3739_p13 = pnand %p3738_p1, %p3732_p0 }
  0xa4   : > { %3742 = shalt.err (!%p3739_p13)
}
  0xa5   : > { %s3892_s19 = smov 384   ;;  %s3893_s16 = smov 24  }
  0xa6   : > { %p4595_p8 = scmp.ne.s32.totalorder %s4584_s30, 0  ;;  %s3894_s15 = smov [#allocation14]  }
  0xa7   : > { %s396_s29 = sshll.u32 %s3894_s15, 4  ;;  %s4596_s18 = sshll.u32 %s3881_s24, 10  ;;  %s397_s29 = int_to_ptr.vmem [resolvable:$true] %s396_s29 }
  0xa8   : > { %3442 = dma.hbm_to_vmem [thread:$0]  (!%p4595_p8), %s4547_s8, 18432, %s373_s28, [#allocation8], %s3892_s19, %s3892_s19, %s3893_s16  }
  0xa9   : > { %s4172_s9 = scalar_lea.hbm %s4545_s6, %s4596_s18  ;;  %s3743_s21 = scalar_lea.hbm %s4549_s10, 6144 }
  0xaa   : > { %p3744_p13 = scmp.ne.s32.totalorder %s4549_s10, %s3743_s21  ;;  %p3750_p5 = scmp.lt.u32.totalorder %s3743_s21, %s4549_s10 }
  0xac   : > { %p3746_p2 = pnand %p3744_p13, %p4020_p10 }
  0xae   : > { %p3747_p4 = pneg %p3746_p2 }
  0xb0   : > { %p3752_p6 = pnand %p3750_p5, %p3747_p4 }
  0xb2   : > { %3755 = shalt.err (!%p3752_p6)
}
  0xb3   : > { %s3756_s24 = scalar_lea.vmem %s397_s29, 6144  ;;  %p3764_p3 = scmp.lt.s32.totalorder %s397_s29, %s397_s29 }
  0xb4   : > { %p3757_p9 = scmp.ne.s32.totalorder %s397_s29, %s3756_s24  ;;  %p3765_p7 = scmp.lt.s32.totalorder %s3756_s24, %s3756_s24 }
  0xb6   : > { %p3759_p12 = pnand %p3757_p9, %p4020_p10  ;;  %p3766_p1 = por %p3765_p7, %p3764_p3 }
  0xb8   : > { %p3760_p0 = pneg %p3759_p12 }
  0xba   : > { %p3767_p11 = pnand %p3766_p1, %p3760_p0 }
  0xbc   : > { %3770 = shalt.err (!%p3767_p11)
}
  0xbd   : > { %s4597_s3 = smov 8   ;;  %s4598_s4 = smov 128  }
  0xbe   : > { %3448 = dma.hbm_to_vmem [thread:$0]  (!%p4595_p8), %s4549_s10, 6144, %s397_s29, [#allocation13], %s4598_s4, %s4598_s4, %s4597_s3  }
  0xbf   : > { %s456_s20 = scalar_lea.vmem [#allocation10], %s4098_s13  ;;  %s3771_s16 = scalar_lea.hbm %s4172_s9, 1024 }
  0xc0   : > { %s463_s17 = sshll.u32 %s456_s20, 4  ;;  %p3772_p10 = scmp.ne.s32.totalorder %s4172_s9, %s3771_s16  ;;  %s4196_s17 = int_to_ptr.vmem [resolvable:$true] %s463_s17 }
  0xc1   : > { %p4599_p11 = scmp.ne.s32.totalorder %s4592_s0, 0  ;;  %s3776_s11 = scalar_lea.hbm %s4545_s6, 3072 }
  0xc2   : > { %p3777_p5 = scmp.lt.u32.totalorder %s4172_s9, %s4545_s6  ;;  %p3778_p6 = scmp.lt.u32.totalorder %s3776_s11, %s3771_s16 }
  0xc3   : > { %p4600_p13 = pneg %p4599_p11  ;;  %p3780_p9 = scmp.lt.u32.totalorder %s3771_s16, %s4172_s9 }
  0xc4   : > { %p3779_p8 = por %p3778_p6, %p3777_p5 }
  0xc5   : > { %p3774_p2 = pnand %p3772_p10, %p4600_p13 }
  0xc6   : > { %p3781_p12 = por %p3780_p9, %p3779_p8 }
  0xc7   : > { %p3775_p4 = pneg %p3774_p2 }
  0xc9   : > { %p3782_p0 = pnand %p3781_p12, %p3775_p4 }
  0xcb   : > { %3785 = shalt.err (!%p3782_p0)
}
  0xcc   : > { %s3786_s13 = scalar_lea.vmem %s4196_s17, 1024  ;;  %p4601_p7 = pmov %p4600_p13 }
  0xcd   : > { %p3787_p3 = scmp.ne.s32.totalorder %s4196_s17, %s3786_s13  ;;  %s3895_s29 = smov [#allocation10]  }
  0xce   : > { %s3791_s5 = sshll.u32 %s3895_s29, 4  ;;  %s3792_s5 = int_to_ptr.vmem [resolvable:$false] %s3791_s5 }
  0xcf   : > { %p3789_p1 = pnand %p3787_p3, %p4601_p7  ;;  %s3793_s1 = scalar_lea.vmem %s3792_s5, 2048 }
  0xd0   : > { %p3794_p13 = scmp.lt.s32.totalorder %s4196_s17, %s3792_s5  ;;  %p3795_p2 = scmp.lt.s32.totalorder %s3793_s1, %s3786_s13 }
  0xd1   : > { %p3790_p10 = pneg %p3789_p1 }
  0xd2   : > { %p3796_p5 = por %p3795_p2, %p3794_p13 }
  0xd4   : > { %p3797_p6 = pnand %p3796_p5, %p3790_p10 }
  0xd6   : > { %3800 = shalt.err (!%p3797_p6)
}
  0xd7   : > { %3455 = dma.hbm_to_vmem [thread:$0]  (!%p4599_p11), %s4172_s9, 1024, %s4196_s17, %s4117_s14, %s4594_s7, %s4594_s7, %s4593_s12  }
  0xd8   : > { %p4602_p4 = scmp.ne.s32.totalorder %s4583_s27, 0 }
  0xd9   : > { %p4603_p8 = scmp.eq.s32.totalorder (!%p4602_p4), %s3985_s25, 0 }
  0xda   : > { %481 = sbr.rel (%p4602_p4) target bundleno = 1988 (0x7c4), region = 68 }
  0xe1   : > { %3844 = dma.done.wait (%p4603_p8), [#allocation5], 4096   ;;  %p4604_p9 = pmov %p4603_p8 }
  0xe2   : > { %p4605_p12 = pmov %p4603_p8 }
  0xe3   : > { %3846 = vsyncadd (%p4604_p9), [#allocation5], 4294963200 }
  0xe4   : > { %3848 = dma.done.wait (%p4605_p12), [#allocation8], 2048   ;;  %p4606_p0 = pmov %p4603_p8 }
  0xe5   : > { %s491_s0 = sand.u32 1, %s3985_s25   ;;  %s493_s14 = sand.u32 1, %s3873_s22  }
  0xe6   : > { %3850 = vsyncadd (%p4606_p0), [#allocation8], 4294965248  ;;  %s2680_s12 = sshll.u32 %s493_s14, 6  ;;  %s492_s27 = scalar_lea.sflag [#allocation5], %s491_s0 }
  0xe7   : > { %s4237_s7 = scalar_lea.vmem [#allocation9], %s2680_s12  ;;  %p4607_p11 = scmp.ne.s32.totalorder %s4582_s26, 0 }
  0xe9   : > { %3852 = dma.done.wait (%p4607_p11), %s492_s27, 2048  }
  0xea   : > { %3854 = vsyncadd (%p4607_p11), %s492_s27, 4294965248  ;;  %s4243_s9 = scalar_lea.vmem [#allocation10], %s2680_s12  ;;  %p4608_p3 = pmov %p4606_p0 }
  0xeb   : > { %p4609_p7 = pmov %p4606_p0 }
  0xec   : > { %3856 = dma.done.wait (%p4608_p3), [#allocation8], 18432  }
  0xed   : > { %3858 = vsyncadd (%p4609_p7), [#allocation8], 4294948864  ;;  %p4610_p1 = pmov %p4606_p0 }
  0xee   : > { %p4611_p10 = pmov %p4606_p0 }
  0xef   : > { %3860 = dma.done.wait (%p4610_p1), [#allocation13], 6192  }
  0xf0   : > { %3862 = vsyncadd (%p4611_p10), [#allocation13], 4294961104  ;;  %p569_p13 = scmp.lt.s32.totalorder %s3985_s25, 2  ;;  %s4612_s24 = sld [smem:[#allocation28_spill]] }
  0xf1   : > { %s4613_s21 = sld [smem:[#allocation29_spill]]  ;;  %s4614_s30 = sld [smem:[#allocation30_spill]] }
  0xf2   : > { %s4255_s28 = scalar_select %p569_p13, %s3985_s25, 2 }
  0xf3   : > { %s4615_s18 = sld [smem:[#allocation31_spill]]  ;;  %p4616_p2 = scmp.ne.s32.totalorder %s3985_s25, 0 }
  0xf4   : > { %v3517_v0 = vld [vmem:[#allocation7] sm:$0xff] (!%p4616_p2)   ;;  %v730_v1 = vlaneseq (!%p4616_p2)  ;;  %v3518_v2 = vld [vmem:[#allocation7 + $0x8] sm:$0xff] (!%p4616_p2)   ;;  %v3519_v3 = vld [vmem:[#allocation7 + $0x10] sm:$0xff] (!%p4616_p2)   ;;  %v3896_v5 = vmov (!%p4616_p2), 0.0  }
  0xf5   : > { %585 = sbr.rel (%p4616_p2) target bundleno = 254 (0xfe), region = 100  ;;  %714 = vst [vmem:[#allocation2] sm:$0xff] (!%p4616_p2), %v3517_v0  ;;  %715 = vst [vmem:[#allocation2 + $0x8] sm:$0xff] (!%p4616_p2), %v3518_v2  ;;  %v3520_v4 = vld [vmem:[#allocation7 + $0x18] sm:$0xff] (!%p4616_p2)   ;;  %v3521_v6 = vld [vmem:[#allocation7 + $0x20] sm:$0xff] (!%p4616_p2)  }
  0xf6   : > { %s571_s3 = scalar_lea.vmem %s4612_s24, %s4255_s28  ;;  %vm732_vm0 = vcmp.lt.s32.totalorder (!%p4616_p2), %v730_v1, 384  ;;  %716 = vst [vmem:[#allocation2 + $0x10] sm:$0xff] (!%p4616_p2), %v3519_v3  ;;  %717 = vst [vmem:[#allocation2 + $0x18] sm:$0xff] (!%p4616_p2), %v3520_v4  ;;  %v3522_v7 = vld [vmem:[#allocation7 + $0x28] sm:$0xff] (!%p4616_p2)   ;;  %v3523_v8 = vld [vmem:[#allocation7 + $0x30] sm:$0xff] (!%p4616_p2)  }
  0xf7   : > { %s574_s20 = scalar_lea.vmem %s4613_s21, %s4255_s28  ;;  %s577_s2 = scalar_lea.vmem %s4614_s30, %s4255_s28  ;;  %734 = vst.msk [vmem:[#allocation3] sm:$0x7] (!%p4616_p2), %vm732_vm0, %v3896_v5  ;;  %718 = vst [vmem:[#allocation2 + $0x20] sm:$0xff] (!%p4616_p2), %v3521_v6  ;;  %v3524_v9 = vld [vmem:[#allocation7 + $0x38] sm:$0xff] (!%p4616_p2)   ;;  %v3525_v10 = vld [vmem:[#allocation7 + $0x40] sm:$0xff] (!%p4616_p2)  }
  0xf8   : > { %719 = vst [vmem:[#allocation2 + $0x28] sm:$0xff] (!%p4616_p2), %v3522_v7  ;;  %720 = vst [vmem:[#allocation2 + $0x30] sm:$0xff] (!%p4616_p2), %v3523_v8  ;;  %v3526_v11 = vld [vmem:[#allocation7 + $0x48] sm:$0xff] (!%p4616_p2)   ;;  %v3527_v12 = vld [vmem:[#allocation7 + $0x50] sm:$0xff] (!%p4616_p2)  }
  0xf9   : > { %s580_s13 = scalar_lea.vmem %s4615_s18, %s4255_s28  ;;  %721 = vst [vmem:[#allocation2 + $0x38] sm:$0xff] (!%p4616_p2), %v3524_v9  ;;  %722 = vst [vmem:[#allocation2 + $0x40] sm:$0xff] (!%p4616_p2), %v3525_v10  ;;  %v3528_v13 = vld [vmem:[#allocation7 + $0x58] sm:$0xff] (!%p4616_p2)   ;;  %v3529_v14 = vld [vmem:[#allocation7 + $0x60] sm:$0xff] (!%p4616_p2)  }
  0xfa   : > { %723 = vst [vmem:[#allocation2 + $0x48] sm:$0xff] (!%p4616_p2), %v3526_v11  ;;  %724 = vst [vmem:[#allocation2 + $0x50] sm:$0xff] (!%p4616_p2), %v3527_v12  ;;  %v3530_v15 = vld [vmem:[#allocation7 + $0x68] sm:$0xff] (!%p4616_p2)   ;;  %v3531_v16 = vld [vmem:[#allocation7 + $0x70] sm:$0xff] (!%p4616_p2)  }
  0xfb   : > { %725 = vst [vmem:[#allocation2 + $0x58] sm:$0xff] (!%p4616_p2), %v3528_v13  ;;  %726 = vst [vmem:[#allocation2 + $0x60] sm:$0xff] (!%p4616_p2), %v3529_v14  ;;  %v3532_v17 = vld [vmem:[#allocation7 + $0x78] sm:$0xff] (!%p4616_p2)  }
  0xfc   : > { %727 = vst [vmem:[#allocation2 + $0x68] sm:$0xff] %v3530_v15  ;;  %728 = vst [vmem:[#allocation2 + $0x70] sm:$0xff] %v3531_v16 }
  0xfd   : > { %729 = vst [vmem:[#allocation2 + $0x78] sm:$0xff] %v3532_v17 }
  0xfe PF: > { %v767_v19 = vld [vmem:[#allocation2] sm:$0xff]  ;;  %v768_v21 = vld [vmem:[#allocation2 + $0x8] sm:$0xff]  ;;  %v3583_v39 = vld [vmem:[%s4237_s7 + $0x10] sm:$0xff]   ;;  %p4621_p5 = scmp.ne.s32.totalorder %s3985_s25, 0 }
  0xff   : > { %v3535_v23 = vld [vmem:[#allocation4 + $0x4] ss:$8 sps:$4 sm:$0xff]   ;;  %v770_v26 = vld [vmem:[#allocation2 + $0x18] sm:$0xff]  ;;  %v3533_v35 = vld [vmem:[#allocation4] ss:$8 sps:$4 sm:$0xff]  }
 0x100   : > { %v769_v24 = vld [vmem:[#allocation2 + $0x10] sm:$0xff]  ;;  %975 = vmatprep.mubr.bf16.mxu0 %v3535_v23  ;;  %v771_v28 = vld [vmem:[#allocation2 + $0x20] sm:$0xff] }
 0x101   : > { %v772_v30 = vld [vmem:[#allocation2 + $0x28] sm:$0xff]  ;;  %v773_v32 = vld [vmem:[#allocation2 + $0x30] sm:$0xff]  ;;  %v3584_v40 = vld [vmem:[%s4237_s7 + $0x18] sm:$0xff]  }
 0x102   : > { %v775_v18 = vld [vmem:[#allocation2 + $0x40] sm:$0xff]  ;;  %v774_v34 = vld [vmem:[#allocation2 + $0x38] sm:$0xff]  ;;  %v3582_v37 = vld [vmem:[%s4237_s7 + $0x8] sm:$0xff]  }
 0x103   : > { %v776_v20 = vld [vmem:[#allocation2 + $0x48] sm:$0xff]  ;;  %2763 = vmatprep.subr.bf16.mxu0 %v775_v18  ;;  %v777_v22 = vld [vmem:[#allocation2 + $0x50] sm:$0xff]  ;;  %v3588_v4 = vld [vmem:[%s4237_s7 + $0x38] sm:$0xff]  }
 0x104   : > { %2764 = vmatpush3.bf16.msra.mxu0 %v767_v19  ;;  %v778_v25 = vld [vmem:[#allocation2 + $0x58] sm:$0xff]  ;;  %v779_v27 = vld [vmem:[#allocation2 + $0x60] sm:$0xff]  ;;  %v3586_v0 = vld [vmem:[%s4237_s7 + $0x28] sm:$0xff]  }
 0x105   : > { %2765 = vmatprep.subr.bf16.mxu0 %v776_v20  ;;  %v780_v29 = vld [vmem:[#allocation2 + $0x68] sm:$0xff]  ;;  %v781_v31 = vld [vmem:[#allocation2 + $0x70] sm:$0xff]  ;;  %v782_v33 = vld [vmem:[#allocation2 + $0x78] sm:$0xff] }
 0x106   : > { %v3581_v36 = vld [vmem:[%s4237_s7] sm:$0xff]   ;;  %v3536_v38 = vld [vmem:[#allocation4 + $0x14] ss:$8 sps:$4 sm:$0xff]   ;;  %v3538_v41 = vld [vmem:[#allocation4 + $0x10] ss:$8 sps:$4 sm:$0xff]  }
 0x107   : > { %3027 = vmatprep.subr.bf16.mxu1 %v3581_v36  ;;  %v3539_v42 = vld [vmem:[#allocation4 + $0x24] ss:$8 sps:$4 sm:$0xff]   ;;  %v3541_v43 = vld [vmem:[#allocation4 + $0x20] ss:$8 sps:$4 sm:$0xff]   ;;  %v3542_v44 = vld [vmem:[#allocation4 + $0x34] ss:$8 sps:$4 sm:$0xff]  }
 0x108   : > { %2766 = vmatpush3.bf16.msra.mxu0 %v768_v21  ;;  %3028 = vmatpush3.bf16.msra.mxu1 %v3581_v36  ;;  %v3544_v45 = vld [vmem:[#allocation4 + $0x30] ss:$8 sps:$4 sm:$0xff]   ;;  %v3545_v46 = vld [vmem:[#allocation4 + $0x44] ss:$8 sps:$4 sm:$0xff]   ;;  %v3547_v47 = vld [vmem:[#allocation4 + $0x40] ss:$8 sps:$4 sm:$0xff]  }
 0x109   : > { %2767 = vmatprep.subr.bf16.mxu0 %v777_v22  ;;  %3029 = vmatprep.subr.bf16.mxu1 %v3582_v37  ;;  %v3548_v48 = vld [vmem:[#allocation4 + $0x54] ss:$8 sps:$4 sm:$0xff]   ;;  %v3550_v49 = vld [vmem:[#allocation4 + $0x50] ss:$8 sps:$4 sm:$0xff]   ;;  %v3551_v50 = vld [vmem:[#allocation4 + $0x64] ss:$8 sps:$4 sm:$0xff]  }
 0x10a   : > { %v3553_v51 = vld [vmem:[#allocation4 + $0x60] ss:$8 sps:$4 sm:$0xff]   ;;  %v3554_v52 = vld [vmem:[#allocation4 + $0x74] ss:$8 sps:$4 sm:$0xff]   ;;  %v3556_v53 = vld [vmem:[#allocation4 + $0x70] ss:$8 sps:$4 sm:$0xff]  }
 0x10b   : > { %v3557_v54 = vld [vmem:[#allocation4 + $0x84] ss:$8 sps:$4 sm:$0xff]   ;;  %v3559_v55 = vld [vmem:[#allocation4 + $0x80] ss:$8 sps:$4 sm:$0xff]   ;;  %v3560_v56 = vld [vmem:[#allocation4 + $0x94] ss:$8 sps:$4 sm:$0xff]  }
 0x10c   : > { %2768 = vmatpush3.bf16.msra.mxu0 %v769_v24  ;;  %3030 = vmatpush3.bf16.msra.mxu1 %v3582_v37  ;;  %v3562_v57 = vld [vmem:[#allocation4 + $0x90] ss:$8 sps:$4 sm:$0xff]   ;;  %v3563_v58 = vld [vmem:[#allocation4 + $0xa4] ss:$8 sps:$4 sm:$0xff]   ;;  %v3565_v59 = vld [vmem:[#allocation4 + $0xa0] ss:$8 sps:$4 sm:$0xff]  }
 0x10d   : > { %2769 = vmatprep.subr.bf16.mxu0 %v778_v25  ;;  %3031 = vmatprep.subr.bf16.mxu1 %v3583_v39  ;;  %v3566_v60 = vld [vmem:[#allocation4 + $0xb4] ss:$8 sps:$4 sm:$0xff]   ;;  %v3585_v61 = vld [vmem:[%s4237_s7 + $0x20] sm:$0xff]   ;;  %v3568_v62 = vld [vmem:[#allocation4 + $0xb0] ss:$8 sps:$4 sm:$0xff]  }
 0x10e   : > { %v3569_v63 = vld [vmem:[#allocation4 + $0xc4] ss:$8 sps:$4 sm:$0xff]   ;;  %v3587_v1 = vld [vmem:[%s4237_s7 + $0x30] sm:$0xff]   ;;  %v3571_v2 = vld [vmem:[#allocation4 + $0xc0] ss:$8 sps:$4 sm:$0xff]  }
 0x10f   : > { %v3572_v3 = vld [vmem:[#allocation4 + $0xd4] ss:$8 sps:$4 sm:$0xff]   ;;  %v3574_v5 = vld [vmem:[#allocation4 + $0xd0] ss:$8 sps:$4 sm:$0xff]   ;;  %v3575_v6 = vld [vmem:[#allocation4 + $0xe4] ss:$8 sps:$4 sm:$0xff]  }
 0x110   : > { %2770 = vmatpush3.bf16.msra.mxu0 %v770_v26  ;;  %3032 = vmatpush3.bf16.msra.mxu1 %v3583_v39  ;;  %v3577_v7 = vld [vmem:[#allocation4 + $0xe0] ss:$8 sps:$4 sm:$0xff]   ;;  %v3578_v8 = vld [vmem:[#allocation4 + $0xf4] ss:$8 sps:$4 sm:$0xff]   ;;  %v3580_v9 = vld [vmem:[#allocation4 + $0xf0] ss:$8 sps:$4 sm:$0xff]  }
 0x111   : > { %2771 = vmatprep.subr.bf16.mxu0 %v779_v27  ;;  %3033 = vmatprep.subr.bf16.mxu1 %v3584_v40  ;;  %v3589_v11 = vld [vmem:[%s4243_s9] sm:$0xff]   ;;  %v3590_v25 = vld [vmem:[%s4243_s9 + $0x8] sm:$0xff]  }
 0x112   : > { %v3593_v39 = vld [vmem:[%s4243_s9 + $0x20] sm:$0xff]  }
 0x114   : > { %2772 = vmatpush3.bf16.msra.mxu0 %v771_v28  ;;  %3034 = vmatpush3.bf16.msra.mxu1 %v3584_v40 }
 0x115   : > { %2773 = vmatprep.subr.bf16.mxu0 %v780_v29  ;;  %3035 = vmatprep.subr.bf16.mxu1 %v3585_v61 }
 0x118   : > { %2774 = vmatpush3.bf16.msra.mxu0 %v772_v30  ;;  %3036 = vmatpush3.bf16.msra.mxu1 %v3585_v61  ;;  %v3591_v30 = vld [vmem:[%s4243_s9 + $0x10] sm:$0xff]  }
 0x119   : > { %2775 = vmatprep.subr.bf16.mxu0 %v781_v31  ;;  %3037 = vmatprep.subr.bf16.mxu1 %v3586_v0 }
 0x11c   : > { %2776 = vmatpush3.bf16.msra.mxu0 %v773_v32  ;;  %3038 = vmatpush3.bf16.msra.mxu1 %v3586_v0 }
 0x11d   : > { %2777 = vmatprep.subr.bf16.mxu0 %v782_v33  ;;  %3039 = vmatprep.subr.bf16.mxu1 %v3587_v1 }
 0x120   : > { %2778 = vmatpush3.bf16.msra.mxu0 %v774_v34  ;;  %3040 = vmatpush3.bf16.msra.mxu1 %v3587_v1  ;;  %v3592_v34 = vld [vmem:[%s4243_s9 + $0x18] sm:$0xff]  }
 0x121   : > { %3041 = vmatprep.subr.bf16.mxu1 %v3588_v4 }
 0x123   : > { %976 = vmatmul.mubr.bf16.vlgmr.msra.gmra.mrb[0].mxu0 %v3533_v35 }
 0x124   : > { %983 = vmatprep.mubr.bf16.mxu0 %v3536_v38  ;;  %3042 = vmatpush3.bf16.msra.mxu1 %v3588_v4 }
 0x125   : > { %3075 = vmatprep.subr.bf16.mxu1 %v3589_v11 }
 0x12b   : > { %984 = vmatmul.mubr.bf16.gmra.mrb[4].mxu0 %v3538_v41 }
 0x12c   : > { %991 = vmatprep.mubr.bf16.mxu0 %v3539_v42 }
 0x133   : > { %992 = vmatmul.mubr.bf16.gmra.mrb[8].mxu0 %v3541_v43 }
 0x134   : > { %999 = vmatprep.mubr.bf16.mxu0 %v3542_v44 }
 0x13b   : > { %1000 = vmatmul.mubr.bf16.gmra.mrb[12].mxu0 %v3544_v45 }
 0x13c   : > { %1007 = vmatprep.mubr.bf16.mxu0 %v3545_v46 }
 0x143   : > { %1008 = vmatmul.mubr.bf16.gmra.mrb[16].mxu0 %v3547_v47 }
 0x144   : > { %1015 = vmatprep.mubr.bf16.mxu0 %v3548_v48 }
 0x14b   : > { %1016 = vmatmul.mubr.bf16.gmra.mrb[20].mxu0 %v3550_v49 }
 0x14c   : > { %1023 = vmatprep.mubr.bf16.mxu0 %v3551_v50 }
 0x153   : > { %1024 = vmatmul.mubr.bf16.gmra.mrb[24].mxu0 %v3553_v51 }
 0x154   : > { %1031 = vmatprep.mubr.bf16.mxu0 %v3554_v52 }
 0x15b   : > { %1032 = vmatmul.mubr.bf16.gmra.mrb[28].mxu0 %v3556_v53 }
 0x15c   : > { %1039 = vmatprep.mubr.bf16.mxu0 %v3557_v54 }
 0x163   : > { %1040 = vmatmul.mubr.bf16.gmra.mrb[32].mxu0 %v3559_v55 }
 0x164   : > { %1047 = vmatprep.mubr.bf16.mxu0 %v3560_v56 }
 0x16b   : > { %1048 = vmatmul.mubr.bf16.gmra.mrb[36].mxu0 %v3562_v57 }
 0x16c   : > { %1055 = vmatprep.mubr.bf16.mxu0 %v3563_v58 }
 0x173   : > { %1056 = vmatmul.mubr.bf16.gmra.mrb[40].mxu0 %v3565_v59 }
 0x174   : > { %1063 = vmatprep.mubr.bf16.mxu0 %v3566_v60 }
 0x17b   : > { %1064 = vmatmul.mubr.bf16.gmra.mrb[44].mxu0 %v3568_v62 }
 0x17c   : > { %1071 = vmatprep.mubr.bf16.mxu0 %v3569_v63 }
 0x183   : > { %1072 = vmatmul.mubr.bf16.gmra.mrb[48].mxu0 %v3571_v2 }
 0x184   : > { %1079 = vmatprep.mubr.bf16.mxu0 %v3572_v3 }
 0x18b   : > { %1080 = vmatmul.mubr.bf16.gmra.mrb[52].mxu0 %v3574_v5 }
 0x18c   : > { %1087 = vmatprep.mubr.bf16.mxu0 %v3575_v6 }
 0x193   : > { %1088 = vmatmul.mubr.bf16.gmra.mrb[56].mxu0 %v3577_v7 }
 0x194   : > { %1095 = vmatprep.mubr.bf16.mxu0 %v3578_v8 }
 0x19b   : > { %1096 = vmatmul.mubr.bf16.gmra.mrb[60].mxu0 %v3580_v9 }
 0x1f6   : > { %v2779_v10 = vpop.f32.mrb[0].mxu0 }
 0x1f7   : > { %v2780_v12 = vpop.f32.mrb[1].mxu0 }
 0x1f8   : > { %v2781_v13 = vadd.f32 %v2780_v12, %v2779_v10  ;;  %v2782_v14 = vpop.f32.mrb[2].mxu0 }
 0x1f9   : > { %v2783_v15 = vpop.f32.mrb[3].mxu0 }
 0x1fa   : > { %v2784_v16 = vadd.f32 %v2783_v15, %v2782_v14 }
 0x1fc   : > { %v1104_v17 = vpack.c.bf16 %v2784_v16, %v2781_v13 }
 0x1fe   : > { %v2785_v18 = vpop.f32.mrb[4].mxu0  ;;  %3043 = vmatprep.mubr.bf16.mxu1 %v1104_v17 }
 0x1ff   : > { %v2786_v19 = vpop.f32.mrb[5].mxu0 }
 0x200   : > { %v2787_v20 = vadd.f32 %v2786_v19, %v2785_v18  ;;  %v2788_v21 = vpop.f32.mrb[6].mxu0 }
 0x201   : > { %v2789_v22 = vpop.f32.mrb[7].mxu0 }
 0x202   : > { %v2790_v23 = vadd.f32 %v2789_v22, %v2788_v21 }
 0x204   : > { %v1105_v24 = vpack.c.bf16 %v2790_v23, %v2787_v20 }
 0x206   : > { %v2791_v26 = vpop.f32.mrb[8].mxu0  ;;  %3044 = vmatmul.mubr.bf16.vlgmr.msra.gmra.mrb[0].mxu1 %v1105_v24 }
 0x207   : > { %v2792_v27 = vpop.f32.mrb[9].mxu0  ;;  %3076 = vmatpush3.bf16.msra.mxu1 %v3589_v11 }
 0x208   : > { %v2793_v28 = vadd.f32 %v2792_v27, %v2791_v26  ;;  %v2794_v29 = vpop.f32.mrb[10].mxu0  ;;  %3077 = vmatprep.subr.bf16.mxu1 %v3590_v25 }
 0x209   : > { %v2795_v31 = vpop.f32.mrb[11].mxu0 }
 0x20a   : > { %v2796_v32 = vadd.f32 %v2795_v31, %v2794_v29 }
 0x20b   : > { %3078 = vmatpush3.bf16.msra.mxu1 %v3590_v25 }
 0x20c   : > { %v1106_v33 = vpack.c.bf16 %v2796_v32, %v2793_v28  ;;  %3079 = vmatprep.subr.bf16.mxu1 %v3591_v30 }
 0x20e   : > { %v2797_v35 = vpop.f32.mrb[12].mxu0  ;;  %3047 = vmatprep.mubr.bf16.mxu1 %v1106_v33 }
 0x20f   : > { %v2798_v36 = vpop.f32.mrb[13].mxu0  ;;  %3080 = vmatpush3.bf16.msra.mxu1 %v3591_v30 }
 0x210   : > { %v2799_v37 = vadd.f32 %v2798_v36, %v2797_v35  ;;  %v2800_v38 = vpop.f32.mrb[14].mxu0  ;;  %3081 = vmatprep.subr.bf16.mxu1 %v3592_v34 }
 0x211   : > { %v2801_v40 = vpop.f32.mrb[15].mxu0 }
 0x212   : > { %v2802_v41 = vadd.f32 %v2801_v40, %v2800_v38 }
 0x213   : > { %3082 = vmatpush3.bf16.msra.mxu1 %v3592_v34 }
 0x214   : > { %v1107_v42 = vpack.c.bf16 %v2802_v41, %v2799_v37  ;;  %3083 = vmatprep.subr.bf16.mxu1 %v3593_v39  ;;  %v3594_v41 = vld [vmem:[%s4243_s9 + $0x28] sm:$0xff]  }
 0x216   : > { %v2803_v43 = vpop.f32.mrb[16].mxu0  ;;  %3048 = vmatmul.mubr.bf16.gmra.mrb[4].mxu1 %v1107_v42 }
 0x217   : > { %v2804_v44 = vpop.f32.mrb[17].mxu0  ;;  %3084 = vmatpush3.bf16.msra.mxu1 %v3593_v39 }
 0x218   : > { %v2805_v45 = vadd.f32 %v2804_v44, %v2803_v43  ;;  %v2806_v46 = vpop.f32.mrb[18].mxu0  ;;  %3085 = vmatprep.subr.bf16.mxu1 %v3594_v41  ;;  %v3595_v44 = vld [vmem:[%s4243_s9 + $0x30] sm:$0xff]  }
 0x219   : > { %v2807_v47 = vpop.f32.mrb[19].mxu0 }
 0x21a   : > { %v2808_v48 = vadd.f32 %v2807_v47, %v2806_v46 }
 0x21b   : > { %3086 = vmatpush3.bf16.msra.mxu1 %v3594_v41 }
 0x21c   : > { %v1108_v49 = vpack.c.bf16 %v2808_v48, %v2805_v45  ;;  %3087 = vmatprep.subr.bf16.mxu1 %v3595_v44 }
 0x21e   : > { %v2809_v50 = vpop.f32.mrb[20].mxu0  ;;  %3051 = vmatprep.mubr.bf16.mxu1 %v1108_v49 }
 0x21f   : > { %v2810_v51 = vpop.f32.mrb[21].mxu0  ;;  %3088 = vmatpush3.bf16.msra.mxu1 %v3595_v44 }
 0x220   : > { %v2811_v52 = vadd.f32 %v2810_v51, %v2809_v50  ;;  %v2812_v53 = vpop.f32.mrb[22].mxu0  ;;  %v3596_v50 = vld [vmem:[%s4243_s9 + $0x38] sm:$0xff]  }
 0x221   : > { %v2813_v54 = vpop.f32.mrb[23].mxu0  ;;  %3089 = vmatprep.subr.bf16.mxu1 %v3596_v50 }
 0x222   : > { %v2814_v55 = vadd.f32 %v2813_v54, %v2812_v53 }
 0x223   : > { %3090 = vmatpush3.bf16.msra.mxu1 %v3596_v50 }
 0x224   : > { %v1109_v56 = vpack.c.bf16 %v2814_v55, %v2811_v52 }
 0x226   : > { %v2815_v57 = vpop.f32.mrb[24].mxu0  ;;  %3052 = vmatmul.mubr.bf16.gmra.mrb[8].mxu1 %v1109_v56 }
 0x227   : > { %v2816_v58 = vpop.f32.mrb[25].mxu0 }
 0x228   : > { %v2817_v59 = vadd.f32 %v2816_v58, %v2815_v57  ;;  %v2818_v60 = vpop.f32.mrb[26].mxu0 }
 0x229   : > { %v2819_v61 = vpop.f32.mrb[27].mxu0 }
 0x22a   : > { %v2820_v62 = vadd.f32 %v2819_v61, %v2818_v60 }
 0x22c   : > { %v1110_v63 = vpack.c.bf16 %v2820_v62, %v2817_v59 }
 0x22e   : > { %v2821_v0 = vpop.f32.mrb[28].mxu0  ;;  %3055 = vmatprep.mubr.bf16.mxu1 %v1110_v63 }
 0x22f   : > { %v2822_v1 = vpop.f32.mrb[29].mxu0 }
 0x230   : > { %v2823_v2 = vadd.f32 %v2822_v1, %v2821_v0  ;;  %v2824_v3 = vpop.f32.mrb[30].mxu0 }
 0x231   : > { %v2825_v4 = vpop.f32.mrb[31].mxu0 }
 0x232   : > { %v2826_v5 = vadd.f32 %v2825_v4, %v2824_v3  ;;  %v4303_v4 = vld [vmem:[%s574_s20] ss:$0 sm:$0xff] }
 0x234   : > { %v1111_v6 = vpack.c.bf16 %v2826_v5, %v2823_v2  ;;  %v4296_v2 = vld [vmem:[%s571_s3] ss:$0 sm:$0xff] }
 0x236   : > { %v2827_v7 = vpop.f32.mrb[32].mxu0  ;;  %3056 = vmatmul.mubr.bf16.gmra.mrb[12].mxu1 %v1111_v6 }
 0x237   : > { %v2828_v8 = vpop.f32.mrb[33].mxu0 }
 0x238   : > { %v2829_v9 = vadd.f32 %v2828_v8, %v2827_v7  ;;  %v2830_v10 = vpop.f32.mrb[34].mxu0  ;;  %v4311_v7 = vld [vmem:[%s577_s2] ss:$0 sm:$0xff] }
 0x239   : > { %v2831_v11 = vpop.f32.mrb[35].mxu0 }
 0x23a   : > { %v2832_v12 = vadd.f32 %v2831_v11, %v2830_v10 }
 0x23c   : > { %v1112_v13 = vpack.c.bf16 %v2832_v12, %v2829_v9 }
 0x23e   : > { %v2833_v14 = vpop.f32.mrb[36].mxu0  ;;  %3059 = vmatprep.mubr.bf16.mxu1 %v1112_v13 }
 0x23f   : > { %v2834_v15 = vpop.f32.mrb[37].mxu0 }
 0x240   : > { %v2835_v16 = vadd.f32 %v2834_v15, %v2833_v14  ;;  %v2836_v17 = vpop.f32.mrb[38].mxu0 }
 0x241   : > { %v2837_v18 = vpop.f32.mrb[39].mxu0 }
 0x242   : > { %v2838_v19 = vadd.f32 %v2837_v18, %v2836_v17 }
 0x244   : > { %v1113_v20 = vpack.c.bf16 %v2838_v19, %v2835_v16 }
 0x246   : > { %v2839_v21 = vpop.f32.mrb[40].mxu0  ;;  %3060 = vmatmul.mubr.bf16.gmra.mrb[16].mxu1 %v1113_v20 }
 0x247   : > { %v2840_v22 = vpop.f32.mrb[41].mxu0 }
 0x248   : > { %v2841_v23 = vadd.f32 %v2840_v22, %v2839_v21  ;;  %v2842_v24 = vpop.f32.mrb[42].mxu0 }
 0x249   : > { %v2843_v25 = vpop.f32.mrb[43].mxu0 }
 0x24a   : > { %v2844_v26 = vadd.f32 %v2843_v25, %v2842_v24 }
 0x24c   : > { %v1114_v27 = vpack.c.bf16 %v2844_v26, %v2841_v23 }
 0x24e   : > { %v2845_v28 = vpop.f32.mrb[44].mxu0  ;;  %3063 = vmatprep.mubr.bf16.mxu1 %v1114_v27 }
 0x24f   : > { %v2846_v29 = vpop.f32.mrb[45].mxu0 }
 0x250   : > { %v2847_v30 = vadd.f32 %v2846_v29, %v2845_v28  ;;  %v2848_v31 = vpop.f32.mrb[46].mxu0 }
 0x251   : > { %v2849_v32 = vpop.f32.mrb[47].mxu0 }
 0x252   : > { %v2850_v33 = vadd.f32 %v2849_v32, %v2848_v31 }
 0x254   : > { %v1115_v34 = vpack.c.bf16 %v2850_v33, %v2847_v30 }
 0x256   : > { %v2851_v35 = vpop.f32.mrb[48].mxu0  ;;  %3064 = vmatmul.mubr.bf16.gmra.mrb[20].mxu1 %v1115_v34 }
 0x257   : > { %v2852_v36 = vpop.f32.mrb[49].mxu0 }
 0x258   : > { %v2853_v37 = vadd.f32 %v2852_v36, %v2851_v35  ;;  %v2854_v38 = vpop.f32.mrb[50].mxu0 }
 0x259   : > { %v2855_v39 = vpop.f32.mrb[51].mxu0 }
 0x25a   : > { %v2856_v40 = vadd.f32 %v2855_v39, %v2854_v38 }
 0x25c   : > { %v1116_v42 = vpack.c.bf16 %v2856_v40, %v2853_v37 }
 0x25e   : > { %v2857_v43 = vpop.f32.mrb[52].mxu0  ;;  %3067 = vmatprep.mubr.bf16.mxu1 %v1116_v42 }
 0x25f   : > { %v2858_v45 = vpop.f32.mrb[53].mxu0 }
 0x260   : > { %v2859_v46 = vadd.f32 %v2858_v45, %v2857_v43  ;;  %v2860_v47 = vpop.f32.mrb[54].mxu0 }
 0x261   : > { %v2861_v48 = vpop.f32.mrb[55].mxu0 }
 0x262   : > { %v2862_v49 = vadd.f32 %v2861_v48, %v2860_v47 }
 0x264   : > { %v1117_v51 = vpack.c.bf16 %v2862_v49, %v2859_v46 }
 0x266   : > { %v2863_v52 = vpop.f32.mrb[56].mxu0  ;;  %3068 = vmatmul.mubr.bf16.gmra.mrb[24].mxu1 %v1117_v51 }
 0x267   : > { %v2864_v53 = vpop.f32.mrb[57].mxu0 }
 0x268   : > { %v2865_v54 = vadd.f32 %v2864_v53, %v2863_v52  ;;  %v2866_v55 = vpop.f32.mrb[58].mxu0 }
 0x269   : > { %v2867_v56 = vpop.f32.mrb[59].mxu0 }
 0x26a   : > { %v2868_v57 = vadd.f32 %v2867_v56, %v2866_v55 }
 0x26c   : > { %v1118_v58 = vpack.c.bf16 %v2868_v57, %v2865_v54 }
 0x26e   : > { %v2869_v59 = vpop.f32.mrb[60].mxu0  ;;  %3071 = vmatprep.mubr.bf16.mxu1 %v1118_v58 }
 0x26f   : > { %v2870_v60 = vpop.f32.mrb[61].mxu0 }
 0x270   : > { %v2871_v61 = vadd.f32 %v2870_v60, %v2869_v59  ;;  %v2872_v62 = vpop.f32.mrb[62].mxu0 }
 0x271   : > { %v2873_v63 = vpop.f32.mrb[63].mxu0 }
 0x272   : > { %v2874_v0 = vadd.f32 %v2873_v63, %v2872_v62 }
 0x274   : > { %v1119_v1 = vpack.c.bf16 %v2874_v0, %v2871_v61 }
 0x276   : > { %3072 = vmatmul.mubr.bf16.gmra.mrb[28].mxu1 %v1119_v1 }
 0x2d9   : > { %v3045_v3 = vpop.f32.mrb[0].mxu1 }
 0x2da   : > { %v1234_v5 = vadd.f32 %v3045_v3, %v4296_v2  ;;  %v1225_v6 = vpop.f32.mrb[1].mxu1 }
 0x2db   : > { %v1226_v8 = vadd.f32 %v4296_v2, %v1225_v6  ;;  %v3046_v9 = vpop.f32.mrb[2].mxu1 }
 0x2dc   : > { %v1361_v10 = vmul.f32 %v4303_v4, %v1234_v5  ;;  %v1237_v11 = vadd.f32 %v3046_v9, %v4296_v2  ;;  %v1228_v12 = vpop.f32.mrb[3].mxu1 }
 0x2dd   : > { %v1359_v13 = vmul.f32 %v4303_v4, %v1226_v8  ;;  %v1229_v14 = vadd.f32 %v4296_v2, %v1228_v12 }
 0x2de   : > { %v1400_v15 = vadd.f32 %v4311_v7, %v1361_v10  ;;  %v1362_v16 = vmul.f32 %v4303_v4, %v1237_v11 }
 0x2df   : > { %v1398_v17 = vadd.f32 %v4311_v7, %v1359_v13  ;;  %v1360_v18 = vmul.f32 %v4303_v4, %v1229_v14 }
 0x2e0   : > { %v1401_v19 = vadd.f32 %v4311_v7, %v1362_v16  ;;  %v1432_v21 = vmax.f32 %v1400_v15, 0.0 }
 0x2e1   : > { %v1399_v20 = vadd.f32 %v4311_v7, %v1360_v18  ;;  %v1430_v23 = vmax.f32 %v1398_v17, 0.0 }
 0x2e2   : > { %v1433_v22 = vmax.f32 %v1401_v19, 0.0 }
 0x2e3   : > { %v1431_v24 = vmax.f32 %v1399_v20, 0.0 }
 0x2e4   : > { %v1463_v25 = vpack.c.bf16 %v1433_v22, %v1432_v21 }
 0x2e5   : > { %v1462_v26 = vpack.c.bf16 %v1431_v24, %v1430_v23 }
 0x2e7   : > { %3091 = vmatprep.mubr.bf16.mxu1 %v1462_v26 }
 0x2e8   : > { %3092 = vmatmul.mubr.bf16.vlgmr.msra.gmra.mrb[32].mxu1 %v1463_v25 }
 0x2e9   : > { %v3049_v27 = vpop.f32.mrb[4].mxu1 }
 0x2ea   : > { %v1250_v28 = vadd.f32 %v3049_v27, %v4296_v2  ;;  %v1241_v29 = vpop.f32.mrb[5].mxu1 }
 0x2eb   : > { %v1242_v30 = vadd.f32 %v4296_v2, %v1241_v29  ;;  %v3050_v31 = vpop.f32.mrb[6].mxu1 }
 0x2ec   : > { %v1365_v32 = vmul.f32 %v4303_v4, %v1250_v28  ;;  %v1253_v33 = vadd.f32 %v3050_v31, %v4296_v2  ;;  %v1244_v34 = vpop.f32.mrb[7].mxu1 }
 0x2ed   : > { %v1363_v35 = vmul.f32 %v4303_v4, %v1242_v30  ;;  %v1245_v36 = vadd.f32 %v4296_v2, %v1244_v34 }
 0x2ee   : > { %v1404_v37 = vadd.f32 %v4311_v7, %v1365_v32  ;;  %v1366_v38 = vmul.f32 %v4303_v4, %v1253_v33 }
 0x2ef   : > { %v1402_v39 = vadd.f32 %v4311_v7, %v1363_v35  ;;  %v1364_v40 = vmul.f32 %v4303_v4, %v1245_v36 }
 0x2f0   : > { %v1405_v41 = vadd.f32 %v4311_v7, %v1366_v38  ;;  %v1436_v43 = vmax.f32 %v1404_v37, 0.0 }
 0x2f1   : > { %v1403_v42 = vadd.f32 %v4311_v7, %v1364_v40  ;;  %v1434_v45 = vmax.f32 %v1402_v39, 0.0 }
 0x2f2   : > { %v1437_v44 = vmax.f32 %v1405_v41, 0.0 }
 0x2f3   : > { %v1435_v46 = vmax.f32 %v1403_v42, 0.0 }
 0x2f4   : > { %v1465_v47 = vpack.c.bf16 %v1437_v44, %v1436_v43 }
 0x2f5   : > { %v1464_v48 = vpack.c.bf16 %v1435_v46, %v1434_v45 }
 0x2f7   : > { %3095 = vmatprep.mubr.bf16.mxu1 %v1464_v48 }
 0x2f8   : > { %3096 = vmatmul.mubr.bf16.gmra.mrb[36].mxu1 %v1465_v47 }
 0x2f9   : > { %v3053_v49 = vpop.f32.mrb[8].mxu1 }
 0x2fa   : > { %v1266_v50 = vadd.f32 %v3053_v49, %v4296_v2  ;;  %v1257_v51 = vpop.f32.mrb[9].mxu1 }
 0x2fb   : > { %v1258_v52 = vadd.f32 %v4296_v2, %v1257_v51  ;;  %v3054_v53 = vpop.f32.mrb[10].mxu1 }
 0x2fc   : > { %v1369_v54 = vmul.f32 %v4303_v4, %v1266_v50  ;;  %v1269_v55 = vadd.f32 %v3054_v53, %v4296_v2  ;;  %v1260_v56 = vpop.f32.mrb[11].mxu1 }
 0x2fd   : > { %v1367_v57 = vmul.f32 %v4303_v4, %v1258_v52  ;;  %v1261_v58 = vadd.f32 %v4296_v2, %v1260_v56 }
 0x2fe   : > { %v1408_v59 = vadd.f32 %v4311_v7, %v1369_v54  ;;  %v1370_v60 = vmul.f32 %v4303_v4, %v1269_v55 }
 0x2ff   : > { %v1406_v61 = vadd.f32 %v4311_v7, %v1367_v57  ;;  %v1368_v62 = vmul.f32 %v4303_v4, %v1261_v58 }
 0x300   : > { %v1409_v63 = vadd.f32 %v4311_v7, %v1370_v60  ;;  %v1440_v1 = vmax.f32 %v1408_v59, 0.0 }
 0x301   : > { %v1407_v0 = vadd.f32 %v4311_v7, %v1368_v62  ;;  %v1438_v5 = vmax.f32 %v1406_v61, 0.0 }
 0x302   : > { %v1441_v3 = vmax.f32 %v1409_v63, 0.0 }
 0x303   : > { %v1439_v6 = vmax.f32 %v1407_v0, 0.0 }
 0x304   : > { %v1467_v8 = vpack.c.bf16 %v1441_v3, %v1440_v1 }
 0x305   : > { %v1466_v9 = vpack.c.bf16 %v1439_v6, %v1438_v5 }
 0x307   : > { %3099 = vmatprep.mubr.bf16.mxu1 %v1466_v9 }
 0x308   : > { %3100 = vmatmul.mubr.bf16.gmra.mrb[40].mxu1 %v1467_v8 }
 0x309   : > { %v3057_v10 = vpop.f32.mrb[12].mxu1 }
 0x30a   : > { %v1282_v11 = vadd.f32 %v3057_v10, %v4296_v2  ;;  %v1273_v12 = vpop.f32.mrb[13].mxu1 }
 0x30b   : > { %v1274_v13 = vadd.f32 %v4296_v2, %v1273_v12  ;;  %v3058_v14 = vpop.f32.mrb[14].mxu1 }
 0x30c   : > { %v1373_v15 = vmul.f32 %v4303_v4, %v1282_v11  ;;  %v1285_v16 = vadd.f32 %v3058_v14, %v4296_v2  ;;  %v1276_v17 = vpop.f32.mrb[15].mxu1 }
 0x30d   : > { %v1371_v18 = vmul.f32 %v4303_v4, %v1274_v13  ;;  %v1277_v19 = vadd.f32 %v4296_v2, %v1276_v17 }
 0x30e   : > { %v1412_v20 = vadd.f32 %v4311_v7, %v1373_v15  ;;  %v1374_v21 = vmul.f32 %v4303_v4, %v1285_v16 }
 0x30f   : > { %v1410_v22 = vadd.f32 %v4311_v7, %v1371_v18  ;;  %v1372_v23 = vmul.f32 %v4303_v4, %v1277_v19 }
 0x310   : > { %v1413_v24 = vadd.f32 %v4311_v7, %v1374_v21  ;;  %v1444_v26 = vmax.f32 %v1412_v20, 0.0 }
 0x311   : > { %v1411_v25 = vadd.f32 %v4311_v7, %v1372_v23  ;;  %v1442_v28 = vmax.f32 %v1410_v22, 0.0 }
 0x312   : > { %v1445_v27 = vmax.f32 %v1413_v24, 0.0 }
 0x313   : > { %v1443_v29 = vmax.f32 %v1411_v25, 0.0 }
 0x314   : > { %v1469_v30 = vpack.c.bf16 %v1445_v27, %v1444_v26 }
 0x315   : > { %v1468_v31 = vpack.c.bf16 %v1443_v29, %v1442_v28 }
 0x317   : > { %3103 = vmatprep.mubr.bf16.mxu1 %v1468_v31 }
 0x318   : > { %3104 = vmatmul.mubr.bf16.gmra.mrb[44].mxu1 %v1469_v30 }
 0x319   : > { %v3061_v32 = vpop.f32.mrb[16].mxu1 }
 0x31a   : > { %v1298_v33 = vadd.f32 %v3061_v32, %v4296_v2  ;;  %v1289_v34 = vpop.f32.mrb[17].mxu1 }
 0x31b   : > { %v1290_v35 = vadd.f32 %v4296_v2, %v1289_v34  ;;  %v3062_v36 = vpop.f32.mrb[18].mxu1 }
 0x31c   : > { %v1377_v37 = vmul.f32 %v4303_v4, %v1298_v33  ;;  %v1301_v38 = vadd.f32 %v3062_v36, %v4296_v2  ;;  %v1292_v39 = vpop.f32.mrb[19].mxu1 }
 0x31d   : > { %v1375_v40 = vmul.f32 %v4303_v4, %v1290_v35  ;;  %v1293_v41 = vadd.f32 %v4296_v2, %v1292_v39 }
 0x31e   : > { %v1416_v42 = vadd.f32 %v4311_v7, %v1377_v37  ;;  %v1378_v43 = vmul.f32 %v4303_v4, %v1301_v38 }
 0x31f   : > { %v1414_v44 = vadd.f32 %v4311_v7, %v1375_v40  ;;  %v1376_v45 = vmul.f32 %v4303_v4, %v1293_v41 }
 0x320   : > { %v1417_v46 = vadd.f32 %v4311_v7, %v1378_v43  ;;  %v1448_v48 = vmax.f32 %v1416_v42, 0.0 }
 0x321   : > { %v1415_v47 = vadd.f32 %v4311_v7, %v1376_v45  ;;  %v1446_v50 = vmax.f32 %v1414_v44, 0.0 }
 0x322   : > { %v1449_v49 = vmax.f32 %v1417_v46, 0.0 }
 0x323   : > { %v1447_v51 = vmax.f32 %v1415_v47, 0.0 }
 0x324   : > { %v1471_v52 = vpack.c.bf16 %v1449_v49, %v1448_v48 }
 0x325   : > { %v1470_v53 = vpack.c.bf16 %v1447_v51, %v1446_v50 }
 0x327   : > { %3107 = vmatprep.mubr.bf16.mxu1 %v1470_v53 }
 0x328   : > { %3108 = vmatmul.mubr.bf16.gmra.mrb[48].mxu1 %v1471_v52 }
 0x329   : > { %v3065_v54 = vpop.f32.mrb[20].mxu1 }
 0x32a   : > { %v1314_v55 = vadd.f32 %v3065_v54, %v4296_v2  ;;  %v1305_v56 = vpop.f32.mrb[21].mxu1 }
 0x32b   : > { %v1306_v57 = vadd.f32 %v4296_v2, %v1305_v56  ;;  %v3066_v58 = vpop.f32.mrb[22].mxu1 }
 0x32c   : > { %v1381_v59 = vmul.f32 %v4303_v4, %v1314_v55  ;;  %v1317_v60 = vadd.f32 %v3066_v58, %v4296_v2  ;;  %v1308_v61 = vpop.f32.mrb[23].mxu1 }
 0x32d   : > { %v1379_v62 = vmul.f32 %v4303_v4, %v1306_v57  ;;  %v1309_v63 = vadd.f32 %v4296_v2, %v1308_v61 }
 0x32e   : > { %v1420_v0 = vadd.f32 %v4311_v7, %v1381_v59  ;;  %v1382_v1 = vmul.f32 %v4303_v4, %v1317_v60 }
 0x32f   : > { %v1418_v3 = vadd.f32 %v4311_v7, %v1379_v62  ;;  %v1380_v5 = vmul.f32 %v4303_v4, %v1309_v63 }
 0x330   : > { %v1421_v6 = vadd.f32 %v4311_v7, %v1382_v1  ;;  %v1452_v9 = vmax.f32 %v1420_v0, 0.0 }
 0x331   : > { %v1419_v8 = vadd.f32 %v4311_v7, %v1380_v5  ;;  %v1450_v11 = vmax.f32 %v1418_v3, 0.0 }
 0x332   : > { %v1453_v10 = vmax.f32 %v1421_v6, 0.0 }
 0x333   : > { %v1451_v12 = vmax.f32 %v1419_v8, 0.0 }
 0x334   : > { %v1473_v13 = vpack.c.bf16 %v1453_v10, %v1452_v9 }
 0x335   : > { %v1472_v14 = vpack.c.bf16 %v1451_v12, %v1450_v11 }
 0x337   : > { %3111 = vmatprep.mubr.bf16.mxu1 %v1472_v14 }
 0x338   : > { %3112 = vmatmul.mubr.bf16.gmra.mrb[52].mxu1 %v1473_v13 }
 0x339   : > { %v3069_v15 = vpop.f32.mrb[24].mxu1 }
 0x33a   : > { %v1330_v16 = vadd.f32 %v3069_v15, %v4296_v2  ;;  %v1321_v17 = vpop.f32.mrb[25].mxu1 }
 0x33b   : > { %v1322_v18 = vadd.f32 %v4296_v2, %v1321_v17  ;;  %v3070_v19 = vpop.f32.mrb[26].mxu1 }
 0x33c   : > { %v1385_v20 = vmul.f32 %v4303_v4, %v1330_v16  ;;  %v1333_v21 = vadd.f32 %v3070_v19, %v4296_v2  ;;  %v1324_v22 = vpop.f32.mrb[27].mxu1 }
 0x33d   : > { %v1383_v23 = vmul.f32 %v4303_v4, %v1322_v18  ;;  %v1325_v24 = vadd.f32 %v4296_v2, %v1324_v22 }
 0x33e   : > { %v1424_v25 = vadd.f32 %v4311_v7, %v1385_v20  ;;  %v1386_v26 = vmul.f32 %v4303_v4, %v1333_v21 }
 0x33f   : > { %v1422_v27 = vadd.f32 %v4311_v7, %v1383_v23  ;;  %v1384_v28 = vmul.f32 %v4303_v4, %v1325_v24 }
 0x340   : > { %v1425_v29 = vadd.f32 %v4311_v7, %v1386_v26  ;;  %v1456_v31 = vmax.f32 %v1424_v25, 0.0 }
 0x341   : > { %v1423_v30 = vadd.f32 %v4311_v7, %v1384_v28  ;;  %v1454_v33 = vmax.f32 %v1422_v27, 0.0 }
 0x342   : > { %v1457_v32 = vmax.f32 %v1425_v29, 0.0 }
 0x343   : > { %v1455_v34 = vmax.f32 %v1423_v30, 0.0 }
 0x344   : > { %v1475_v35 = vpack.c.bf16 %v1457_v32, %v1456_v31 }
 0x345   : > { %v1474_v36 = vpack.c.bf16 %v1455_v34, %v1454_v33 }
 0x347   : > { %3115 = vmatprep.mubr.bf16.mxu1 %v1474_v36 }
 0x348   : > { %3116 = vmatmul.mubr.bf16.gmra.mrb[56].mxu1 %v1475_v35 }
 0x349   : > { %v3073_v37 = vpop.f32.mrb[28].mxu1 }
 0x34a   : > { %v1346_v38 = vadd.f32 %v3073_v37, %v4296_v2  ;;  %v1337_v39 = vpop.f32.mrb[29].mxu1 }
 0x34b   : > { %v1338_v40 = vadd.f32 %v4296_v2, %v1337_v39  ;;  %v3074_v41 = vpop.f32.mrb[30].mxu1 }
 0x34c   : > { %v1389_v42 = vmul.f32 %v4303_v4, %v1346_v38  ;;  %v1349_v43 = vadd.f32 %v3074_v41, %v4296_v2  ;;  %v1340_v44 = vpop.f32.mrb[31].mxu1 }
 0x34d   : > { %v1387_v45 = vmul.f32 %v4303_v4, %v1338_v40  ;;  %v1341_v46 = vadd.f32 %v4296_v2, %v1340_v44  ;;  %v4413_v2 = vld [vmem:[%s580_s13] ss:$0 sm:$0xff] }
 0x34e   : > { %v1428_v47 = vadd.f32 %v4311_v7, %v1389_v42  ;;  %v1390_v48 = vmul.f32 %v4303_v4, %v1349_v43 }
 0x34f   : > { %v1426_v49 = vadd.f32 %v4311_v7, %v1387_v45  ;;  %v1388_v50 = vmul.f32 %v4303_v4, %v1341_v46 }
 0x350   : > { %v1429_v51 = vadd.f32 %v4311_v7, %v1390_v48  ;;  %v1460_v53 = vmax.f32 %v1428_v47, 0.0 }
 0x351   : > { %v1427_v52 = vadd.f32 %v4311_v7, %v1388_v50  ;;  %v1458_v55 = vmax.f32 %v1426_v49, 0.0 }
 0x352   : > { %v1461_v54 = vmax.f32 %v1429_v51, 0.0 }
 0x353   : > { %v1459_v56 = vmax.f32 %v1427_v52, 0.0 }
 0x354   : > { %v1477_v57 = vpack.c.bf16 %v1461_v54, %v1460_v53 }
 0x355   : > { %v1476_v58 = vpack.c.bf16 %v1459_v56, %v1458_v55 }
 0x357   : > { %3119 = vmatprep.mubr.bf16.mxu1 %v1476_v58 }
 0x358   : > { %3120 = vmatmul.mubr.bf16.gmra.mrb[60].mxu1 %v1477_v57 }
 0x3bb   : > { %v3093_v59 = vpop.f32.mrb[32].mxu1 }
 0x3bc   : > { %v1592_v4 = vadd.f32 %v3093_v59, %v4413_v2  ;;  %v1583_v60 = vpop.f32.mrb[33].mxu1 }
 0x3bd   : > { %v1584_v7 = vadd.f32 %v4413_v2, %v1583_v60  ;;  %v3094_v61 = vpop.f32.mrb[34].mxu1 }
 0x3be   : > { %v1595_v62 = vadd.f32 %v3094_v61, %v4413_v2  ;;  %v1586_v63 = vpop.f32.mrb[35].mxu1  ;;  %v1712_v1 = vmax.f32 %v1592_v4, 0.0 }
 0x3bf   : > { %v1587_v0 = vadd.f32 %v4413_v2, %v1586_v63  ;;  %v1710_v5 = vmax.f32 %v1584_v7, 0.0 }
 0x3c0   : > { %v1713_v3 = vmax.f32 %v1595_v62, 0.0 }
 0x3c1   : > { %v1711_v6 = vmax.f32 %v1587_v0, 0.0 }
 0x3c2   : > { %v1743_v8 = vpack.c.bf16 %v1713_v3, %v1712_v1 }
 0x3c3   : > { %v1742_v9 = vpack.c.bf16 %v1711_v6, %v1710_v5  ;;  %v1774_v10 = vadd.f32 %v1711_v6, %v1710_v5 }
 0x3c4   : > { %1759 = vst [vmem:[#allocation2 + $0x8] sm:$0xff] %v1743_v8 }
 0x3c5   : > { %1758 = vst [vmem:[#allocation2] sm:$0xff] %v1742_v9  ;;  %v1775_v11 = vadd.f32 %v1774_v10, %v1712_v1 }
 0x3c7   : > { %v1776_v12 = vadd.f32 %v1775_v11, %v1713_v3 }
 0x3cb   : > { %v3097_v13 = vpop.f32.mrb[36].mxu1 }
 0x3cc   : > { %v1608_v14 = vadd.f32 %v3097_v13, %v4413_v2  ;;  %v1599_v15 = vpop.f32.mrb[37].mxu1 }
 0x3cd   : > { %v1600_v16 = vadd.f32 %v4413_v2, %v1599_v15  ;;  %v3098_v17 = vpop.f32.mrb[38].mxu1 }
 0x3ce   : > { %v1611_v18 = vadd.f32 %v3098_v17, %v4413_v2  ;;  %v1602_v19 = vpop.f32.mrb[39].mxu1  ;;  %v1716_v22 = vmax.f32 %v1608_v14, 0.0 }
 0x3cf   : > { %v1714_v20 = vmax.f32 %v1600_v16, 0.0  ;;  %v1603_v21 = vadd.f32 %v4413_v2, %v1602_v19 }
 0x3d0   : > { %v1717_v23 = vmax.f32 %v1611_v18, 0.0 }
 0x3d1   : > { %v1777_v24 = vadd.f32 %v1776_v12, %v1714_v20  ;;  %v1715_v25 = vmax.f32 %v1603_v21, 0.0 }
 0x3d2   : > { %v1745_v26 = vpack.c.bf16 %v1717_v23, %v1716_v22 }
 0x3d3   : > { %v1744_v27 = vpack.c.bf16 %v1715_v25, %v1714_v20  ;;  %v1778_v28 = vadd.f32 %v1777_v24, %v1715_v25 }
 0x3d4   : > { %1761 = vst [vmem:[#allocation2 + $0x18] sm:$0xff] %v1745_v26 }
 0x3d5   : > { %1760 = vst [vmem:[#allocation2 + $0x10] sm:$0xff] %v1744_v27  ;;  %v1779_v29 = vadd.f32 %v1778_v28, %v1716_v22 }
 0x3d7   : > { %v1780_v30 = vadd.f32 %v1779_v29, %v1717_v23 }
 0x3db   : > { %v3101_v31 = vpop.f32.mrb[40].mxu1 }
 0x3dc   : > { %v1624_v32 = vadd.f32 %v3101_v31, %v4413_v2  ;;  %v1615_v33 = vpop.f32.mrb[41].mxu1 }
 0x3dd   : > { %v1616_v34 = vadd.f32 %v4413_v2, %v1615_v33  ;;  %v3102_v35 = vpop.f32.mrb[42].mxu1 }
 0x3de   : > { %v1627_v36 = vadd.f32 %v3102_v35, %v4413_v2  ;;  %v1618_v37 = vpop.f32.mrb[43].mxu1  ;;  %v1720_v40 = vmax.f32 %v1624_v32, 0.0 }
 0x3df   : > { %v1718_v38 = vmax.f32 %v1616_v34, 0.0  ;;  %v1619_v39 = vadd.f32 %v4413_v2, %v1618_v37 }
 0x3e0   : > { %v1721_v41 = vmax.f32 %v1627_v36, 0.0 }
 0x3e1   : > { %v1781_v42 = vadd.f32 %v1780_v30, %v1718_v38  ;;  %v1719_v43 = vmax.f32 %v1619_v39, 0.0 }
 0x3e2   : > { %v1747_v44 = vpack.c.bf16 %v1721_v41, %v1720_v40 }
 0x3e3   : > { %v1746_v45 = vpack.c.bf16 %v1719_v43, %v1718_v38  ;;  %v1782_v46 = vadd.f32 %v1781_v42, %v1719_v43 }
 0x3e4   : > { %1763 = vst [vmem:[#allocation2 + $0x28] sm:$0xff] %v1747_v44 }
 0x3e5   : > { %1762 = vst [vmem:[#allocation2 + $0x20] sm:$0xff] %v1746_v45  ;;  %v1783_v47 = vadd.f32 %v1782_v46, %v1720_v40 }
 0x3e7   : > { %v1784_v48 = vadd.f32 %v1783_v47, %v1721_v41 }
 0x3eb   : > { %v3105_v49 = vpop.f32.mrb[44].mxu1 }
 0x3ec   : > { %v1640_v50 = vadd.f32 %v3105_v49, %v4413_v2  ;;  %v1631_v51 = vpop.f32.mrb[45].mxu1 }
 0x3ed   : > { %v1632_v52 = vadd.f32 %v4413_v2, %v1631_v51  ;;  %v3106_v53 = vpop.f32.mrb[46].mxu1 }
 0x3ee   : > { %v1643_v54 = vadd.f32 %v3106_v53, %v4413_v2  ;;  %v1634_v55 = vpop.f32.mrb[47].mxu1  ;;  %v1724_v58 = vmax.f32 %v1640_v50, 0.0 }
 0x3ef   : > { %v1722_v56 = vmax.f32 %v1632_v52, 0.0  ;;  %v1635_v57 = vadd.f32 %v4413_v2, %v1634_v55 }
 0x3f0   : > { %v1725_v59 = vmax.f32 %v1643_v54, 0.0 }
 0x3f1   : > { %v1785_v4 = vadd.f32 %v1784_v48, %v1722_v56  ;;  %v1723_v60 = vmax.f32 %v1635_v57, 0.0 }
 0x3f2   : > { %v1749_v7 = vpack.c.bf16 %v1725_v59, %v1724_v58 }
 0x3f3   : > { %v1748_v61 = vpack.c.bf16 %v1723_v60, %v1722_v56  ;;  %v1786_v62 = vadd.f32 %v1785_v4, %v1723_v60 }
 0x3f4   : > { %1765 = vst [vmem:[#allocation2 + $0x38] sm:$0xff] %v1749_v7 }
 0x3f5   : > { %1764 = vst [vmem:[#allocation2 + $0x30] sm:$0xff] %v1748_v61  ;;  %v1787_v63 = vadd.f32 %v1786_v62, %v1724_v58 }
 0x3f7   : > { %v1788_v0 = vadd.f32 %v1787_v63, %v1725_v59 }
 0x3fb   : > { %v3109_v1 = vpop.f32.mrb[48].mxu1 }
 0x3fc   : > { %v1656_v3 = vadd.f32 %v3109_v1, %v4413_v2  ;;  %v1647_v5 = vpop.f32.mrb[49].mxu1 }
 0x3fd   : > { %v1648_v6 = vadd.f32 %v4413_v2, %v1647_v5  ;;  %v3110_v8 = vpop.f32.mrb[50].mxu1 }
 0x3fe   : > { %v1659_v9 = vadd.f32 %v3110_v8, %v4413_v2  ;;  %v1650_v10 = vpop.f32.mrb[51].mxu1  ;;  %v1728_v13 = vmax.f32 %v1656_v3, 0.0 }
 0x3ff   : > { %v1726_v11 = vmax.f32 %v1648_v6, 0.0  ;;  %v1651_v12 = vadd.f32 %v4413_v2, %v1650_v10 }
 0x400   : > { %v1729_v14 = vmax.f32 %v1659_v9, 0.0 }
 0x401   : > { %v1789_v15 = vadd.f32 %v1788_v0, %v1726_v11  ;;  %v1727_v16 = vmax.f32 %v1651_v12, 0.0 }
 0x402   : > { %v1751_v17 = vpack.c.bf16 %v1729_v14, %v1728_v13 }
 0x403   : > { %v1750_v18 = vpack.c.bf16 %v1727_v16, %v1726_v11  ;;  %v1790_v19 = vadd.f32 %v1789_v15, %v1727_v16 }
 0x404   : > { %1767 = vst [vmem:[#allocation2 + $0x48] sm:$0xff] %v1751_v17 }
 0x405   : > { %1766 = vst [vmem:[#allocation2 + $0x40] sm:$0xff] %v1750_v18  ;;  %v1791_v20 = vadd.f32 %v1790_v19, %v1728_v13 }
 0x407   : > { %v1792_v21 = vadd.f32 %v1791_v20, %v1729_v14 }
 0x40b   : > { %v3113_v22 = vpop.f32.mrb[52].mxu1 }
 0x40c   : > { %v1672_v23 = vadd.f32 %v3113_v22, %v4413_v2  ;;  %v1663_v24 = vpop.f32.mrb[53].mxu1 }
 0x40d   : > { %v1664_v25 = vadd.f32 %v4413_v2, %v1663_v24  ;;  %v3114_v26 = vpop.f32.mrb[54].mxu1 }
 0x40e   : > { %v1675_v27 = vadd.f32 %v3114_v26, %v4413_v2  ;;  %v1666_v28 = vpop.f32.mrb[55].mxu1  ;;  %v1732_v31 = vmax.f32 %v1672_v23, 0.0 }
 0x40f   : > { %v1730_v29 = vmax.f32 %v1664_v25, 0.0  ;;  %v1667_v30 = vadd.f32 %v4413_v2, %v1666_v28 }
 0x410   : > { %v1733_v32 = vmax.f32 %v1675_v27, 0.0 }
 0x411   : > { %v1793_v33 = vadd.f32 %v1792_v21, %v1730_v29  ;;  %v1731_v34 = vmax.f32 %v1667_v30, 0.0 }
 0x412   : > { %v1753_v35 = vpack.c.bf16 %v1733_v32, %v1732_v31 }
 0x413   : > { %v1752_v36 = vpack.c.bf16 %v1731_v34, %v1730_v29  ;;  %v1794_v37 = vadd.f32 %v1793_v33, %v1731_v34 }
 0x414   : > { %1769 = vst [vmem:[#allocation2 + $0x58] sm:$0xff] %v1753_v35 }
 0x415   : > { %1768 = vst [vmem:[#allocation2 + $0x50] sm:$0xff] %v1752_v36  ;;  %v1795_v38 = vadd.f32 %v1794_v37, %v1732_v31 }
 0x417   : > { %v1796_v39 = vadd.f32 %v1795_v38, %v1733_v32 }
 0x41b   : > { %v3117_v40 = vpop.f32.mrb[56].mxu1 }
 0x41c   : > { %v1688_v41 = vadd.f32 %v3117_v40, %v4413_v2  ;;  %v1679_v42 = vpop.f32.mrb[57].mxu1 }
 0x41d   : > { %v1680_v43 = vadd.f32 %v4413_v2, %v1679_v42  ;;  %v3118_v44 = vpop.f32.mrb[58].mxu1 }
 0x41e   : > { %v1691_v45 = vadd.f32 %v3118_v44, %v4413_v2  ;;  %v1682_v46 = vpop.f32.mrb[59].mxu1  ;;  %v1736_v49 = vmax.f32 %v1688_v41, 0.0 }
 0x41f   : > { %v1734_v47 = vmax.f32 %v1680_v43, 0.0  ;;  %v1683_v48 = vadd.f32 %v4413_v2, %v1682_v46 }
 0x420   : > { %v1737_v50 = vmax.f32 %v1691_v45, 0.0 }
 0x421   : > { %v1797_v51 = vadd.f32 %v1796_v39, %v1734_v47  ;;  %v1735_v52 = vmax.f32 %v1683_v48, 0.0 }
 0x422   : > { %v1755_v53 = vpack.c.bf16 %v1737_v50, %v1736_v49 }
 0x423   : > { %v1754_v54 = vpack.c.bf16 %v1735_v52, %v1734_v47  ;;  %v1798_v55 = vadd.f32 %v1797_v51, %v1735_v52 }
 0x424   : > { %1771 = vst [vmem:[#allocation2 + $0x68] sm:$0xff] %v1755_v53 }
 0x425   : > { %1770 = vst [vmem:[#allocation2 + $0x60] sm:$0xff] %v1754_v54  ;;  %v1799_v56 = vadd.f32 %v1798_v55, %v1736_v49 }
 0x427   : > { %v1800_v57 = vadd.f32 %v1799_v56, %v1737_v50 }
 0x42b   : > { %v3121_v58 = vpop.f32.mrb[60].mxu1 }
 0x42c   : > { %v1704_v59 = vadd.f32 %v3121_v58, %v4413_v2  ;;  %v1695_v4 = vpop.f32.mrb[61].mxu1 }
 0x42d   : > { %v1696_v60 = vadd.f32 %v4413_v2, %v1695_v4  ;;  %v3122_v7 = vpop.f32.mrb[62].mxu1 }
 0x42e   : > { %v1707_v61 = vadd.f32 %v3122_v7, %v4413_v2  ;;  %v1698_v62 = vpop.f32.mrb[63].mxu1  ;;  %v1740_v1 = vmax.f32 %v1704_v59, 0.0 }
 0x42f   : > { %v1738_v63 = vmax.f32 %v1696_v60, 0.0  ;;  %v1699_v0 = vadd.f32 %v4413_v2, %v1698_v62  ;;  %v1814_v2 = vlaneseq (!%p4621_p5) }
 0x430   : > { %v1741_v3 = vmax.f32 %v1707_v61, 0.0 }
 0x431   : > { %v1801_v5 = vadd.f32 %v1800_v57, %v1738_v63  ;;  %v1739_v6 = vmax.f32 %v1699_v0, 0.0  ;;  %vm1816_vm1 = vcmp.lt.s32.totalorder (!%p4621_p5), %v1814_v2, 128 }
 0x432   : > { %v1757_v8 = vpack.c.bf16 %v1741_v3, %v1740_v1 }
 0x433   : > { %v1756_v9 = vpack.c.bf16 %v1739_v6, %v1738_v63  ;;  %v1802_v10 = vadd.f32 %v1801_v5, %v1739_v6 }
 0x434   : > { %1773 = vst [vmem:[#allocation2 + $0x78] sm:$0xff] %v1757_v8 }
 0x435   : > { %1772 = vst [vmem:[#allocation2 + $0x70] sm:$0xff] %v1756_v9  ;;  %v1803_v11 = vadd.f32 %v1802_v10, %v1740_v1 }
 0x437   : > { %v1804_v12 = vadd.f32 %v1803_v11, %v1741_v3 }
 0x439   : > { %v1805_v13 = vrot.slane %v1804_v12, 4 }
 0x43b   : > { %v1806_v14 = vadd.f32 %v1805_v13, %v1804_v12 }
 0x43d   : > { %v1807_v15 = vrot.slane %v1806_v14, 2  ;;  %1813 = sbr.rel (%p4621_p5) target bundleno = 1094 (0x446), region = 104 }
 0x43f   : > { %v1808_v16 = vadd.f32 %v1807_v15, %v1806_v14 }
 0x441   : > { %v1809_v17 = vrot.slane %v1808_v16, 1 }
 0x443   : > { %v1810_v18 = vadd.f32 %v1809_v17, %v1808_v16 }
 0x445   : > { %1818 = vst.msk [vmem:[#allocation3] sm:$0x1] %vm1816_vm1, %v1810_v18 }
 0x446 PF: > { %p2755_p6 = scmp.ne.s32.totalorder %s3985_s25, 1 }
 0x447   : > { %v1823_v19 = vlaneseq (!%p2755_p6) }
 0x448   : > { %1822 = sbr.rel (%p2755_p6) target bundleno = 1103 (0x44f), region = 108 }
 0x449   : > { %vm1825_vm2 = vcmp.lt.s32.totalorder (!%p2755_p6), %v1823_v19, 128 }
 0x44a   : > { %1827 = vst.msk [vmem:[#allocation3 + $0x1] sm:$0x1] (!%p2755_p6), %vm1825_vm2, %v1810_v18 }
 0x44f PF: > { %p2756_p4 = scmp.ne.s32.totalorder %s3985_s25, 2 }
 0x450   : > { %v1839_v20 = vld [vmem:[#allocation11 + $0x8] sm:$0xff] (!%p2756_p4)  ;;  %v1842_v21 = vld [vmem:[#allocation11 + $0x20] sm:$0xff] (!%p2756_p4)  ;;  %v1832_v23 = vlaneseq (!%p2756_p4)  ;;  %v1841_v25 = vld [vmem:[#allocation11 + $0x18] sm:$0xff] (!%p2756_p4)  ;;  %vm3898_vm4 = vmmov (!%p2756_p4), 0   ;;  %s4622_s4 = sld [smem:[#allocation33_spill]] (!%p2756_p4)  ;;  %vm2489_vm5 = vcmask (!%p2756_p4), 1040384  }
 0x451   : > { %1831 = sbr.rel (%p2756_p4) target bundleno = 1957 (0x7a5), region = 112  ;;  %v1838_v22 = vld [vmem:[#allocation11] sm:$0xff] (!%p2756_p4)  ;;  %v3193_v24 = vpack.c.bf16 (!%p2756_p4), %v1842_v21, %v1839_v20  ;;  %v1845_v26 = vld [vmem:[#allocation11 + $0x38] sm:$0xff] (!%p2756_p4)  ;;  %v1848_v27 = vld [vmem:[#allocation11 + $0x50] sm:$0xff] (!%p2756_p4) }
 0x452   : > { %v3195_v28 = vpack.c.bf16 (!%p2756_p4), %v1841_v25, %v1838_v22  ;;  %v3197_v29 = vpack.c.bf16 (!%p2756_p4), %v1848_v27, %v1845_v26  ;;  %v1844_v30 = vld [vmem:[#allocation11 + $0x30] sm:$0xff] (!%p2756_p4)  ;;  %v1847_v31 = vld [vmem:[#allocation11 + $0x48] sm:$0xff] (!%p2756_p4)  ;;  %vm1834_vm3 = vcmp.lt.s32.totalorder (!%p2756_p4), %v1832_v23, 128  ;;  %v1854_v33 = vld [vmem:[#allocation11 + $0x80] sm:$0xff] (!%p2756_p4)  ;;  %v4453_v26 = vshrl.u32 (!%p2756_p4), %v1832_v23, 7 }
 0x453   : > { %v1851_v32 = vld [vmem:[#allocation11 + $0x68] sm:$0xff] (!%p2756_p4)  ;;  %3194 = vmatprep.subr.bf16.mxu0 (!%p2756_p4), %v3193_v24  ;;  %1836 = vst.msk [vmem:[#allocation3 + $0x2] sm:$0x1] (!%p2756_p4), %vm1834_vm3, %v1810_v18  ;;  %v3199_v34 = vpack.c.bf16 (!%p2756_p4), %v1847_v31, %v1844_v30  ;;  %v1850_v35 = vld [vmem:[#allocation11 + $0x60] sm:$0xff] (!%p2756_p4)  ;;  %v1888_v36 = vld [vmem:[#allocation11 + $0x190] sm:$0xff] (!%p2756_p4) }
 0x454   : > { %3196 = vmatpush1.bf16.msra.mxu0 (!%p2756_p4), %v3195_v28  ;;  %v1891_v37 = vld [vmem:[#allocation11 + $0x1a8] sm:$0xff] (!%p2756_p4)  ;;  %v3201_v38 = vpack.c.bf16 (!%p2756_p4), %v1854_v33, %v1851_v32  ;;  %v1853_v39 = vld [vmem:[#allocation11 + $0x78] sm:$0xff] (!%p2756_p4)  ;;  %v1840_v41 = vld [vmem:[#allocation11 + $0x10] sm:$0xff] (!%p2756_p4) }
 0x455   : > { %3198 = vmatprep.subr.bf16.mxu0 (!%p2756_p4), %v3197_v29  ;;  %v3289_v40 = vpack.c.bf16 (!%p2756_p4), %v1891_v37, %v1888_v36  ;;  %v1843_v42 = vld [vmem:[#allocation11 + $0x28] sm:$0xff] (!%p2756_p4)  ;;  %v1857_v43 = vld [vmem:[#allocation11 + $0x98] sm:$0xff] (!%p2756_p4)  ;;  %v1860_v44 = vld [vmem:[#allocation11 + $0xb0] sm:$0xff] (!%p2756_p4)  ;;  %v3203_v48 = vpack.c.bf16 (!%p2756_p4), %v1853_v39, %v1850_v35  ;;  %v1990_v39 = vsub.s32 (!%p2756_p4), 1, %v4453_v26 }
 0x456   : > { %v3291_v45 = vpack.c.bf16 (!%p2756_p4), %v1843_v42, %v1840_v41  ;;  %v1894_v46 = vld [vmem:[#allocation11 + $0x1c0] sm:$0xff] (!%p2756_p4)  ;;  %v1897_v47 = vld [vmem:[#allocation11 + $0x1d8] sm:$0xff] (!%p2756_p4)  ;;  %v1856_v49 = vld [vmem:[#allocation11 + $0x90] sm:$0xff] (!%p2756_p4)  ;;  %v3205_v53 = vpack.c.bf16 (!%p2756_p4), %v1860_v44, %v1857_v43 }
 0x457   : > { %3290 = vmatprep.subr.bf16.mxu1 (!%p2756_p4), %v3289_v40  ;;  %v3293_v50 = vpack.c.bf16 (!%p2756_p4), %v1897_v47, %v1894_v46  ;;  %v1846_v51 = vld [vmem:[#allocation11 + $0x40] sm:$0xff] (!%p2756_p4)  ;;  %v1849_v52 = vld [vmem:[#allocation11 + $0x58] sm:$0xff] (!%p2756_p4)  ;;  %v1859_v54 = vld [vmem:[#allocation11 + $0xa8] sm:$0xff] (!%p2756_p4) }
 0x458   : > { %3200 = vmatpush1.bf16.msra.mxu0 %v3199_v34  ;;  %3292 = vmatpush3.bf16.msra.mxu1 %v3291_v45  ;;  %v3295_v55 = vpack.c.bf16 %v1849_v52, %v1846_v51  ;;  %v1900_v56 = vld [vmem:[#allocation11 + $0x1f0] sm:$0xff]  ;;  %v1903_v57 = vld [vmem:[#allocation11 + $0x208] sm:$0xff]  ;;  %v1866_v59 = vld [vmem:[#allocation11 + $0xe0] sm:$0xff]  ;;  %v3207_v61 = vpack.c.bf16 %v1859_v54, %v1856_v49 }
 0x459   : > { %3202 = vmatprep.subr.bf16.mxu0 %v3201_v38  ;;  %3294 = vmatprep.subr.bf16.mxu1 %v3293_v50  ;;  %v1863_v58 = vld [vmem:[#allocation11 + $0xc8] sm:$0xff]  ;;  %v3297_v4 = vpack.c.bf16 %v1903_v57, %v1900_v56  ;;  %v1852_v60 = vld [vmem:[#allocation11 + $0x70] sm:$0xff]  ;;  %v1862_v62 = vld [vmem:[#allocation11 + $0xc0] sm:$0xff] }
 0x45a   : > { %v1855_v7 = vld [vmem:[#allocation11 + $0x88] sm:$0xff]  ;;  %v1906_v0 = vld [vmem:[#allocation11 + $0x220] sm:$0xff]  ;;  %v1909_v1 = vld [vmem:[#allocation11 + $0x238] sm:$0xff]  ;;  %v3209_v3 = vpack.c.bf16 %v1866_v59, %v1863_v58 }
 0x45b   : > { %v3299_v63 = vpack.c.bf16 %v1855_v7, %v1852_v60  ;;  %v1865_v5 = vld [vmem:[#allocation11 + $0xd8] sm:$0xff]  ;;  %v3301_v6 = vpack.c.bf16 %v1909_v1, %v1906_v0  ;;  %v1858_v8 = vld [vmem:[#allocation11 + $0xa0] sm:$0xff]  ;;  %v1872_v11 = vld [vmem:[#allocation11 + $0x110] sm:$0xff] }
 0x45c   : > { %3204 = vmatpush1.bf16.msra.mxu0 %v3203_v48  ;;  %3296 = vmatpush3.bf16.msra.mxu1 %v3295_v55  ;;  %v1861_v9 = vld [vmem:[#allocation11 + $0xb8] sm:$0xff]  ;;  %v1912_v12 = vld [vmem:[#allocation11 + $0x250] sm:$0xff]  ;;  %v1915_v13 = vld [vmem:[#allocation11 + $0x268] sm:$0xff]  ;;  %v3211_v14 = vpack.c.bf16 %v1865_v5, %v1862_v62 }
 0x45d   : > { %3206 = vmatprep.subr.bf16.mxu0 %v3205_v53  ;;  %3298 = vmatprep.subr.bf16.mxu1 %v3297_v4  ;;  %v1869_v10 = vld [vmem:[#allocation11 + $0xf8] sm:$0xff]  ;;  %v1868_v15 = vld [vmem:[#allocation11 + $0xf0] sm:$0xff]  ;;  %v1871_v16 = vld [vmem:[#allocation11 + $0x108] sm:$0xff]  ;;  %v3303_v17 = vpack.c.bf16 %v1861_v9, %v1858_v8  ;;  %v3305_v19 = vpack.c.bf16 %v1915_v13, %v1912_v12 }
 0x45e   : > { %v3213_v18 = vpack.c.bf16 %v1872_v11, %v1869_v10  ;;  %v1875_v2 = vld [vmem:[#allocation11 + $0x128] sm:$0xff]  ;;  %v1864_v20 = vld [vmem:[#allocation11 + $0xd0] sm:$0xff]  ;;  %v1878_v22 = vld [vmem:[#allocation11 + $0x140] sm:$0xff]  ;;  %v3215_v27 = vpack.c.bf16 %v1871_v16, %v1868_v15  ;;  %v3897_v16 = vmov 0.0|0.0  }
 0x45f   : > { %v1867_v21 = vld [vmem:[#allocation11 + $0xe8] sm:$0xff]  ;;  %v1918_v24 = vld [vmem:[#allocation11 + $0x280] sm:$0xff]  ;;  %v1921_v25 = vld [vmem:[#allocation11 + $0x298] sm:$0xff]  ;;  %v3217_v31 = vpack.c.bf16 %v1878_v22, %v1875_v2 }
 0x460   : > { %3208 = vmatpush1.bf16.msra.mxu0 %v3207_v61  ;;  %3300 = vmatpush3.bf16.msra.mxu1 %v3299_v63  ;;  %v1874_v28 = vld [vmem:[#allocation11 + $0x120] sm:$0xff]  ;;  %v1877_v29 = vld [vmem:[#allocation11 + $0x138] sm:$0xff]  ;;  %v3307_v30 = vpack.c.bf16 %v1867_v21, %v1864_v20  ;;  %v3309_v33 = vpack.c.bf16 %v1921_v25, %v1918_v24  ;;  %v1884_v36 = vld [vmem:[#allocation11 + $0x170] sm:$0xff]  ;;  %v1986_v61 = vsub.s32 0, %v4453_v26 }
 0x461   : > { %3210 = vmatprep.subr.bf16.mxu0 %v3209_v3  ;;  %3302 = vmatprep.subr.bf16.mxu1 %v3301_v6  ;;  %v1881_v32 = vld [vmem:[#allocation11 + $0x158] sm:$0xff]  ;;  %v1870_v34 = vld [vmem:[#allocation11 + $0x100] sm:$0xff]  ;;  %v1924_v37 = vld [vmem:[#allocation11 + $0x2b0] sm:$0xff]  ;;  %v3219_v23 = vpack.c.bf16 %v1877_v29, %v1874_v28 }
 0x462   : > { %v1873_v35 = vld [vmem:[#allocation11 + $0x118] sm:$0xff]  ;;  %v1927_v38 = vld [vmem:[#allocation11 + $0x2c8] sm:$0xff]  ;;  %v1880_v40 = vld [vmem:[#allocation11 + $0x150] sm:$0xff]  ;;  %v3221_v44 = vpack.c.bf16 %v1884_v36, %v1881_v32 }
 0x463   : > { %v1883_v41 = vld [vmem:[#allocation11 + $0x168] sm:$0xff]  ;;  %v3311_v43 = vpack.c.bf16 %v1873_v35, %v1870_v34  ;;  %v3313_v45 = vpack.c.bf16 %v1927_v38, %v1924_v37  ;;  %v1876_v46 = vld [vmem:[#allocation11 + $0x130] sm:$0xff]  ;;  %v4456_v48 = vld [vmem:[#allocation3] sm:$0x7] }
 0x464   : > { %3212 = vmatpush1.bf16.msra.mxu0 %v3211_v14  ;;  %3304 = vmatpush3.bf16.msra.mxu1 %v3303_v17  ;;  %v1887_v42 = vld [vmem:[#allocation11 + $0x188] sm:$0xff]  ;;  %v1890_v49 = vld [vmem:[#allocation11 + $0x1a0] sm:$0xff]  ;;  %v1933_v51 = vld [vmem:[#allocation11 + $0x2f8] sm:$0xff]  ;;  %v1991_v52 = vrot.slane %v4456_v48, %v1990_v39  ;;  %v3223_v53 = vpack.c.bf16 %v1883_v41, %v1880_v40  ;;  %v4465_v10 = vrot.slane %v4456_v48, %v1986_v61 }
 0x465   : > { %3214 = vmatprep.subr.bf16.mxu0 %v3213_v18  ;;  %3306 = vmatprep.subr.bf16.mxu1 %v3305_v19  ;;  %v1879_v47 = vld [vmem:[#allocation11 + $0x148] sm:$0xff]  ;;  %v1930_v50 = vld [vmem:[#allocation11 + $0x2e0] sm:$0xff]  ;;  %v3225_v56 = vpack.c.bf16 %v1890_v49, %v1887_v42  ;;  %v1889_v57 = vld [vmem:[#allocation11 + $0x198] sm:$0xff] }
 0x466   : > { %v1886_v54 = vld [vmem:[#allocation11 + $0x180] sm:$0xff]  ;;  %v3315_v55 = vpack.c.bf16 %v1879_v47, %v1876_v46  ;;  %v3317_v58 = vpack.c.bf16 %v1933_v51, %v1930_v50  ;;  %v1885_v4 = vld [vmem:[#allocation11 + $0x178] sm:$0xff]  ;;  %v1896_v7 = vld [vmem:[#allocation11 + $0x1d0] sm:$0xff]  ;;  %2221 = vmatprep.mubr.f32.mxu1 %v1991_v52  ;;  %2079 = vmatprep.mubr.f32.mxu0 %v1991_v52 }
 0x467   : > { %v1882_v59 = vld [vmem:[#allocation11 + $0x160] sm:$0xff]  ;;  %v1893_v60 = vld [vmem:[#allocation11 + $0x1b8] sm:$0xff]  ;;  %v3227_v62 = vpack.c.bf16 %v1889_v57, %v1886_v54  ;;  %v1892_v63 = vld [vmem:[#allocation11 + $0x1b0] sm:$0xff] }
 0x468   : > { %3216 = vmatpush1.bf16.msra.mxu0 %v3215_v27  ;;  %3308 = vmatpush3.bf16.msra.mxu1 %v3307_v30  ;;  %v3319_v0 = vpack.c.bf16 %v1885_v4, %v1882_v59  ;;  %v3229_v1 = vpack.c.bf16 %v1896_v7, %v1893_v60  ;;  %v1895_v3 = vld [vmem:[#allocation11 + $0x1c8] sm:$0xff]  ;;  %v1936_v5 = vld [vmem:[#allocation11 + $0x310] sm:$0xff]  ;;  %v1902_v9 = vld [vmem:[#allocation11 + $0x200] sm:$0xff] }
 0x469   : > { %3218 = vmatprep.subr.bf16.mxu0 %v3217_v31  ;;  %3310 = vmatprep.subr.bf16.mxu1 %v3309_v33  ;;  %v1939_v6 = vld [vmem:[#allocation11 + $0x328] sm:$0xff]  ;;  %v3231_v11 = vpack.c.bf16 %v1895_v3, %v1892_v63  ;;  %v1898_v12 = vld [vmem:[#allocation11 + $0x1e0] sm:$0xff]  ;;  %v1901_v15 = vld [vmem:[#allocation11 + $0x1f8] sm:$0xff]  ;;  %v3899_v31 = vmov 0.0  }
 0x46a   : > { %v1899_v8 = vld [vmem:[#allocation11 + $0x1e8] sm:$0xff]  ;;  %v3322_v13 = vpack.c.bf16 %v1939_v6, %v1936_v5  ;;  %v1942_v17 = vld [vmem:[#allocation11 + $0x340] sm:$0xff]  ;;  %v1945_v18 = vld [vmem:[#allocation11 + $0x358] sm:$0xff]  ;;  %v3235_v20 = vpack.c.bf16 %v1901_v15, %v1898_v12 }
 0x46b   : > { %v3233_v14 = vpack.c.bf16 %v1902_v9, %v1899_v8  ;;  %v1905_v2 = vld [vmem:[#allocation11 + $0x218] sm:$0xff]  ;;  %v1908_v19 = vld [vmem:[#allocation11 + $0x230] sm:$0xff]  ;;  %v3325_v22 = vpack.c.bf16 %v1945_v18, %v1942_v17  ;;  %v1907_v25 = vld [vmem:[#allocation11 + $0x228] sm:$0xff]  ;;  %v1994_v18 = vsub.s32 2, %v4453_v26 }
 0x46c   : > { %3220 = vmatpush1.bf16.msra.mxu0 %v3219_v23  ;;  %3312 = vmatpush3.bf16.msra.mxu1 %v3311_v43  ;;  %v1904_v21 = vld [vmem:[#allocation11 + $0x210] sm:$0xff]  ;;  %v3237_v24 = vpack.c.bf16 %v1908_v19, %v1905_v2  ;;  %v1951_v28 = vld [vmem:[#allocation11 + $0x388] sm:$0xff]  ;;  %v1914_v30 = vld [vmem:[#allocation11 + $0x260] sm:$0xff] }
 0x46d   : > { %3222 = vmatprep.subr.bf16.mxu0 %v3221_v44  ;;  %3314 = vmatprep.subr.bf16.mxu1 %v3313_v45  ;;  %v1948_v27 = vld [vmem:[#allocation11 + $0x370] sm:$0xff]  ;;  %v1911_v29 = vld [vmem:[#allocation11 + $0x248] sm:$0xff]  ;;  %v3239_v32 = vpack.c.bf16 %v1907_v25, %v1904_v21  ;;  %v1910_v33 = vld [vmem:[#allocation11 + $0x240] sm:$0xff] }
 0x46e   : > { %v3328_v34 = vpack.c.bf16 %v1951_v28, %v1948_v27  ;;  %v3241_v35 = vpack.c.bf16 %v1914_v30, %v1911_v29  ;;  %v1913_v36 = vld [vmem:[#allocation11 + $0x258] sm:$0xff]  ;;  %v1954_v37 = vld [vmem:[#allocation11 + $0x3a0] sm:$0xff]  ;;  %v1920_v40 = vld [vmem:[#allocation11 + $0x290] sm:$0xff]  ;;  %v1995_v27 = vrot.slane %v4456_v48, %v1994_v18 }
 0x46f   : > { %v1957_v38 = vld [vmem:[#allocation11 + $0x3b8] sm:$0xff]  ;;  %v3243_v41 = vpack.c.bf16 %v1913_v36, %v1910_v33  ;;  %v1916_v42 = vld [vmem:[#allocation11 + $0x270] sm:$0xff]  ;;  %v1919_v45 = vld [vmem:[#allocation11 + $0x288] sm:$0xff] }
 0x470   : > { %3224 = vmatpush1.bf16.msra.mxu0 %v3223_v53  ;;  %3316 = vmatpush3.bf16.msra.mxu1 %v3315_v55  ;;  %v1917_v23 = vld [vmem:[#allocation11 + $0x278] sm:$0xff]  ;;  %v3331_v43 = vpack.c.bf16 %v1957_v38, %v1954_v37  ;;  %v1960_v46 = vld [vmem:[#allocation11 + $0x3d0] sm:$0xff]  ;;  %v1963_v47 = vld [vmem:[#allocation11 + $0x3e8] sm:$0xff]  ;;  %v3247_v51 = vpack.c.bf16 %v1919_v45, %v1916_v42 }
 0x471   : > { %3226 = vmatprep.subr.bf16.mxu0 %v3225_v56  ;;  %3318 = vmatprep.subr.bf16.mxu1 %v3317_v58  ;;  %v3245_v44 = vpack.c.bf16 %v1920_v40, %v1917_v23  ;;  %v1923_v49 = vld [vmem:[#allocation11 + $0x2a8] sm:$0xff]  ;;  %v1926_v50 = vld [vmem:[#allocation11 + $0x2c0] sm:$0xff]  ;;  %v3334_v53 = vpack.c.bf16 %v1963_v47, %v1960_v46  ;;  %v1925_v55 = vld [vmem:[#allocation11 + $0x2b8] sm:$0xff] }
 0x472   : > { %v1922_v52 = vld [vmem:[#allocation11 + $0x2a0] sm:$0xff]  ;;  %v3249_v54 = vpack.c.bf16 %v1926_v50, %v1923_v49  ;;  %v1969_v57 = vld [vmem:[#allocation11 + $0x418] sm:$0xff]  ;;  %v1932_v59 = vld [vmem:[#allocation11 + $0x2f0] sm:$0xff] }
 0x473   : > { %v1966_v56 = vld [vmem:[#allocation11 + $0x400] sm:$0xff]  ;;  %v1929_v58 = vld [vmem:[#allocation11 + $0x2d8] sm:$0xff]  ;;  %v3251_v4 = vpack.c.bf16 %v1925_v55, %v1922_v52  ;;  %v1928_v60 = vld [vmem:[#allocation11 + $0x2d0] sm:$0xff] }
 0x474   : > { %3228 = vmatpush1.bf16.msra.mxu0 %v3227_v62  ;;  %3320 = vmatpush3.bf16.msra.mxu1 %v3319_v0  ;;  %v3337_v7 = vpack.c.bf16 %v1969_v57, %v1966_v56  ;;  %v3253_v62 = vpack.c.bf16 %v1932_v59, %v1929_v58  ;;  %v1931_v63 = vld [vmem:[#allocation11 + $0x2e8] sm:$0xff]  ;;  %v1972_v0 = vld [vmem:[#allocation11 + $0x430] sm:$0xff]  ;;  %v1938_v5 = vld [vmem:[#allocation11 + $0x320] sm:$0xff] }
 0x475   : > { %3230 = vmatprep.subr.bf16.mxu0 %v3229_v1  ;;  %3321 = vmatprep.subr.bf16.mxu1 %v3897_v16  ;;  %v1975_v1 = vld [vmem:[#allocation11 + $0x448] sm:$0xff]  ;;  %v3255_v6 = vpack.c.bf16 %v1931_v63, %v1928_v60  ;;  %v1934_v8 = vld [vmem:[#allocation11 + $0x300] sm:$0xff]  ;;  %v1937_v12 = vld [vmem:[#allocation11 + $0x318] sm:$0xff] }
 0x476   : > { %v1935_v3 = vld [vmem:[#allocation11 + $0x308] sm:$0xff]  ;;  %v3340_v9 = vpack.c.bf16 %v1975_v1, %v1972_v0  ;;  %v1941_v15 = vld [vmem:[#allocation11 + $0x338] sm:$0xff]  ;;  %v1944_v17 = vld [vmem:[#allocation11 + $0x350] sm:$0xff]  ;;  %v3259_v2 = vpack.c.bf16 %v1937_v12, %v1934_v8 }
 0x477   : > { %2222 = vmatmul.mubr.f32.vlgmr.msra.gmra.mrb[0].mxu1 %v4465_v10  ;;  %v1940_v21 = vld [vmem:[#allocation11 + $0x330] sm:$0xff]  ;;  %v1950_v25 = vld [vmem:[#allocation11 + $0x380] sm:$0xff]  ;;  %v1953_v33 = vld [vmem:[#allocation11 + $0x398] sm:$0xff] }
 0x478   : > { %3232 = vmatpush1.bf16.msra.mxu0 %v3231_v11  ;;  %3323 = vmatpush3.bf16.msra.mxu1 %v3322_v13  ;;  %v3257_v11 = vpack.c.bf16 %v1938_v5, %v1935_v3  ;;  %v1978_v13 = vld [vmem:[#allocation11 + $0x460] sm:$0xff]  ;;  %v1952_v37 = vld [vmem:[#allocation11 + $0x390] sm:$0xff]  ;;  %v1955_v48 = vld [vmem:[#allocation11 + $0x3a8] sm:$0xff] }
 0x479   : > { %3234 = vmatprep.subr.bf16.mxu0 %v3233_v14  ;;  %3324 = vmatprep.subr.bf16.mxu1 %v3897_v16  ;;  %v1981_v14 = vld [vmem:[#allocation11 + $0x478] sm:$0xff]  ;;  %v1946_v30 = vld [vmem:[#allocation11 + $0x360] sm:$0xff]  ;;  %v1959_v38 = vld [vmem:[#allocation11 + $0x3c8] sm:$0xff]  ;;  %v3271_v23 = vpack.c.bf16 %v1955_v48, %v1952_v37 }
 0x47a   : > { %3155 = vmatprep.mubr.msk.f32.mxu1 %vm3898_vm4, %v3899_v31  ;;  %v3343_v19 = vpack.c.bf16 %v1981_v14, %v1978_v13  ;;  %v1961_v42 = vld [vmem:[#allocation11 + $0x3d8] sm:$0xff]  ;;  %v1964_v47 = vld [vmem:[#allocation11 + $0x3f0] sm:$0xff]  ;;  %v1967_v49 = vld [vmem:[#allocation11 + $0x408] sm:$0xff] }
 0x47b   : > { %v1971_v50 = vld [vmem:[#allocation11 + $0x428] sm:$0xff]  ;;  %v3279_v52 = vpack.c.bf16 %v1967_v49, %v1964_v47  ;;  %v1973_v55 = vld [vmem:[#allocation11 + $0x438] sm:$0xff]  ;;  %v1980_v57 = vld [vmem:[#allocation11 + $0x470] sm:$0xff] }
 0x47c   : > { %3236 = vmatpush1.bf16.msra.mxu0 %v3235_v20  ;;  %3326 = vmatpush3.bf16.msra.mxu1 %v3325_v22  ;;  %v3261_v20 = vpack.c.bf16 %v1944_v17, %v1941_v15  ;;  %v1943_v22 = vld [vmem:[#allocation11 + $0x348] sm:$0xff]  ;;  %v1977_v56 = vld [vmem:[#allocation11 + $0x458] sm:$0xff] }
 0x47d   : > { %3238 = vmatprep.subr.bf16.mxu0 %v3237_v24  ;;  %3327 = vmatprep.subr.bf16.mxu1 %v3897_v16  ;;  %v1947_v24 = vld [vmem:[#allocation11 + $0x368] sm:$0xff]  ;;  %v3263_v28 = vpack.c.bf16 %v1943_v22, %v1940_v21  ;;  %v3285_v59 = vpack.c.bf16 %v1980_v57, %v1977_v56  ;;  %v2334_v1 = vld [vmem:[#allocation14 + $0x110] sm:$0xff]  ;;  %v2335_v3 = vld [vmem:[#allocation14 + $0x118] sm:$0xff] }
 0x47e   : > { %v3265_v29 = vpack.c.bf16 %v1950_v25, %v1947_v24  ;;  %v1979_v60 = vld [vmem:[#allocation11 + $0x468] sm:$0xff]  ;;  %v3381_v5 = vpack.c.bf16 %v2335_v3, %v2334_v1  ;;  %v2339_v12 = vld [vmem:[#allocation14 + $0x138] sm:$0xff]  ;;  %v2346_v37 = vld [vmem:[#allocation14 + $0x170] sm:$0xff] }
 0x47f   : > { %v2333_v63 = vld [vmem:[#allocation14 + $0x108] sm:$0xff]  ;;  %v2340_v14 = vld [vmem:[#allocation14 + $0x140] sm:$0xff]  ;;  %v2347_v48 = vld [vmem:[#allocation14 + $0x178] sm:$0xff] }
 0x480   : > { %3240 = vmatpush1.bf16.msra.mxu0 %v3239_v32  ;;  %3329 = vmatpush3.bf16.msra.mxu1 %v3328_v34  ;;  %v1949_v32 = vld [vmem:[#allocation11 + $0x378] sm:$0xff]  ;;  %v1956_v34 = vld [vmem:[#allocation11 + $0x3b0] sm:$0xff]  ;;  %v2300_v22 = vld [vmem:[#allocation14] sm:$0xff] }
 0x481   : > { %3242 = vmatprep.subr.bf16.mxu0 %v3241_v35  ;;  %3330 = vmatprep.subr.bf16.mxu1 %v3897_v16  ;;  %v3267_v35 = vpack.c.bf16 %v1949_v32, %v1946_v30  ;;  %v3269_v36 = vpack.c.bf16 %v1956_v34, %v1953_v33  ;;  %v2337_v8 = vld [vmem:[#allocation14 + $0x128] sm:$0xff]  ;;  %v2318_v32 = vld [vmem:[#allocation14 + $0x90] sm:$0xff]  ;;  %v2319_v33 = vld [vmem:[#allocation14 + $0x98] sm:$0xff] }
 0x482   : > { %v2341_v15 = vld [vmem:[#allocation14 + $0x148] sm:$0xff]  ;;  %v2302_v34 = vld [vmem:[#allocation14 + $0x10] sm:$0xff]  ;;  %v2307_v49 = vld [vmem:[#allocation14 + $0x38] sm:$0xff] }
 0x483   : > { %v3390_v17 = vpack.c.bf16 %v2341_v15, %v2340_v14  ;;  %v2317_v21 = vld [vmem:[#allocation14 + $0x88] sm:$0xff]  ;;  %v2306_v47 = vld [vmem:[#allocation14 + $0x30] sm:$0xff]  ;;  %v2327_v57 = vld [vmem:[#allocation14 + $0xd8] sm:$0xff] }
 0x484   : > { %3244 = vmatpush1.bf16.msra.mxu0 %v3243_v41  ;;  %3332 = vmatpush3.bf16.msra.mxu1 %v3331_v43  ;;  %v1958_v41 = vld [vmem:[#allocation11 + $0x3c0] sm:$0xff]  ;;  %v1965_v43 = vld [vmem:[#allocation11 + $0x3f8] sm:$0xff]  ;;  %v2301_v25 = vld [vmem:[#allocation14 + $0x8] sm:$0xff] }
 0x485   : > { %3246 = vmatprep.subr.bf16.mxu0 %v3245_v44  ;;  %3333 = vmatprep.subr.bf16.mxu1 %v3897_v16  ;;  %v1968_v44 = vld [vmem:[#allocation11 + $0x410] sm:$0xff]  ;;  %v3275_v45 = vpack.c.bf16 %v1961_v42, %v1958_v41  ;;  %v2304_v41 = vld [vmem:[#allocation14 + $0x20] sm:$0xff] }
 0x486   : > { %v3277_v46 = vpack.c.bf16 %v1968_v44, %v1965_v43  ;;  %v2305_v43 = vld [vmem:[#allocation14 + $0x28] sm:$0xff]  ;;  %v2322_v44 = vld [vmem:[#allocation14 + $0xb0] sm:$0xff]  ;;  %v2312_v1 = vld [vmem:[#allocation14 + $0x60] sm:$0xff] }
 0x487   : > { %v2326_v56 = vld [vmem:[#allocation14 + $0xd0] sm:$0xff]  ;;  %v2313_v3 = vld [vmem:[#allocation14 + $0x68] sm:$0xff] }
 0x488   : > { %3248 = vmatpush1.bf16.msra.mxu0 %v3247_v51  ;;  %3335 = vmatpush3.bf16.msra.mxu1 %v3334_v53  ;;  %v1974_v51 = vld [vmem:[#allocation11 + $0x440] sm:$0xff] }
 0x489   : > { %3250 = vmatprep.subr.bf16.mxu0 %v3249_v54  ;;  %3336 = vmatprep.subr.bf16.mxu1 %v3897_v16  ;;  %v3281_v53 = vpack.c.bf16 %v1974_v51, %v1971_v50  ;;  %v1970_v54 = vld [vmem:[#allocation11 + $0x420] sm:$0xff]  ;;  %v2325_v51 = vld [vmem:[#allocation14 + $0xc8] sm:$0xff] }
 0x48a   : > { %v3283_v58 = vpack.c.bf16 %v1973_v55, %v1970_v54  ;;  %v2324_v50 = vld [vmem:[#allocation14 + $0xc0] sm:$0xff]  ;;  %v2309_v55 = vld [vmem:[#allocation14 + $0x48] sm:$0xff] }
 0x48b   : > { %v2308_v54 = vld [vmem:[#allocation14 + $0x40] sm:$0xff] }
 0x48c   : > { %3252 = vmatpush1.bf16.msra.mxu0 %v3251_v4  ;;  %3338 = vmatpush3.bf16.msra.mxu1 %v3337_v7  ;;  %v1976_v4 = vld [vmem:[#allocation11 + $0x450] sm:$0xff] }
 0x48d   : > { %3254 = vmatprep.subr.bf16.mxu0 %v3253_v62  ;;  %3339 = vmatprep.subr.bf16.mxu1 %v3897_v16  ;;  %v3287_v7 = vpack.c.bf16 %v1979_v60, %v1976_v4  ;;  %v2332_v62 = vld [vmem:[#allocation14 + $0x100] sm:$0xff]  ;;  %v2310_v4 = vld [vmem:[#allocation14 + $0x50] sm:$0xff]  ;;  %v2311_v60 = vld [vmem:[#allocation14 + $0x58] sm:$0xff] }
 0x48e   : > { %v3378_v0 = vpack.c.bf16 %v2333_v63, %v2332_v62  ;;  %v2329_v62 = vld [vmem:[#allocation14 + $0xe8] sm:$0xff]  ;;  %v3367_v63 = vpack.c.bf16 %v2311_v60, %v2310_v4 }
 0x490   : > { %3256 = vmatpush1.bf16.msra.mxu0 %v3255_v6  ;;  %3341 = vmatpush3.bf16.msra.mxu1 %v3340_v9  ;;  %v2336_v6 = vld [vmem:[#allocation14 + $0x120] sm:$0xff] }
 0x491   : > { %3258 = vmatprep.subr.bf16.mxu0 %v3257_v11  ;;  %3342 = vmatprep.subr.bf16.mxu1 %v3897_v16  ;;  %v3384_v9 = vpack.c.bf16 %v2337_v8, %v2336_v6  ;;  %v2338_v11 = vld [vmem:[#allocation14 + $0x130] sm:$0xff]  ;;  %v2331_v8 = vld [vmem:[#allocation14 + $0xf8] sm:$0xff] }
 0x492   : > { %v3387_v13 = vpack.c.bf16 %v2339_v12, %v2338_v11  ;;  %v2330_v6 = vld [vmem:[#allocation14 + $0xf0] sm:$0xff]  ;;  %v2315_v12 = vld [vmem:[#allocation14 + $0x78] sm:$0xff] }
 0x493   : > { %2080 = vmatmul.mubr.f32.vlgmr.msra.gmra.mrb[0].mxu0 %v4465_v10  ;;  %v1962_v10 = vld [vmem:[#allocation11 + $0x3e0] sm:$0xff]  ;;  %v2314_v11 = vld [vmem:[#allocation14 + $0x70] sm:$0xff] }
 0x494   : > { %3260 = vmatpush1.bf16.msra.mxu0 %v3259_v2  ;;  %3344 = vmatpush3.bf16.msra.mxu1 %v3343_v19  ;;  %v3273_v40 = vpack.c.bf16 %v1962_v10, %v1959_v38  ;;  %v2343_v2 = vld [vmem:[#allocation14 + $0x158] sm:$0xff]  ;;  %v3399_v10 = vpack.c.bf16 %v2347_v48, %v2346_v37 }
 0x495   : > { %3262 = vmatprep.subr.bf16.mxu0 %v3261_v20  ;;  %2150 = vmatprep.mubr.f32.mxu0 %v3899_v31  ;;  %v2316_v20 = vld [vmem:[#allocation14 + $0x80] sm:$0xff]  ;;  %v2348_v37 = vld [vmem:[%s4622_s4] sm:$0x1] }
 0x496   : > { %v3345_v24 = vpack.c.bf16 %v2317_v21, %v2316_v20 }
 0x497   : > { %3156 = vmatmul.mubr.f32.vlgmr.msra.gmra.mrb[2].mxu1 %v1995_v27 }
 0x498   : > { %3264 = vmatpush1.bf16.msra.mxu0 %v3263_v28  ;;  %v2345_v28 = vld [vmem:[#allocation14 + $0x168] sm:$0xff]  ;;  %3346 = vmatprep.subr.bf16.mxu1 %v3345_v24 }
 0x499   : > { %3266 = vmatprep.subr.bf16.mxu0 %v3265_v29  ;;  %v3347_v29 = vpack.c.bf16 %v2301_v25, %v2300_v22 }
 0x49b   : > { %3348 = vmatpush3.bf16.msra.mxu1 %v3347_v29 }
 0x49c   : > { %3268 = vmatpush1.bf16.msra.mxu0 %v3267_v35  ;;  %v3349_v35 = vpack.c.bf16 %v2319_v33, %v2318_v32 }
 0x49d   : > { %3270 = vmatprep.subr.bf16.mxu0 %v3269_v36  ;;  %v2303_v36 = vld [vmem:[#allocation14 + $0x18] sm:$0xff] }
 0x49e   : > { %v3351_v38 = vpack.c.bf16 %v2303_v36, %v2302_v34  ;;  %3350 = vmatprep.subr.bf16.mxu1 %v3349_v35 }
 0x4a0   : > { %3272 = vmatpush1.bf16.msra.mxu0 %v3271_v23  ;;  %v2320_v23 = vld [vmem:[#allocation14 + $0xa0] sm:$0xff]  ;;  %3352 = vmatpush3.bf16.msra.mxu1 %v3351_v38 }
 0x4a1   : > { %3274 = vmatprep.subr.bf16.mxu0 %v3273_v40  ;;  %v2321_v40 = vld [vmem:[#allocation14 + $0xa8] sm:$0xff] }
 0x4a2   : > { %v3353_v42 = vpack.c.bf16 %v2321_v40, %v2320_v23 }
 0x4a4   : > { %3276 = vmatpush1.bf16.msra.mxu0 %v3275_v45  ;;  %v2323_v45 = vld [vmem:[#allocation14 + $0xb8] sm:$0xff]  ;;  %3354 = vmatprep.subr.bf16.mxu1 %v3353_v42 }
 0x4a5   : > { %3278 = vmatprep.subr.bf16.mxu0 %v3277_v46  ;;  %v3357_v46 = vpack.c.bf16 %v2323_v45, %v2322_v44 }
 0x4a8   : > { %3280 = vmatpush1.bf16.msra.mxu0 %v3279_v52  ;;  %v3359_v52 = vpack.c.bf16 %v2307_v49, %v2306_v47 }
 0x4a9   : > { %3282 = vmatprep.subr.bf16.mxu0 %v3281_v53  ;;  %v3361_v53 = vpack.c.bf16 %v2325_v51, %v2324_v50 }
 0x4ac   : > { %3284 = vmatpush1.bf16.msra.mxu0 %v3283_v58  ;;  %v3363_v58 = vpack.c.bf16 %v2309_v55, %v2308_v54 }
 0x4ad   : > { %3286 = vmatprep.subr.bf16.mxu0 %v3285_v59  ;;  %v3365_v59 = vpack.c.bf16 %v2327_v57, %v2326_v56 }
 0x4b0   : > { %3288 = vmatpush1.bf16.msra.mxu0 %v3287_v7  ;;  %v2328_v7 = vld [vmem:[#allocation14 + $0xe0] sm:$0xff] }
 0x4b1   : > { %3377 = vmatprep.subr.bf16.mxu0 %v3897_v16 }
 0x4b3   : > { %2151 = vmatmul.mubr.f32.vlgmr.msra.gmra.mrb[0].mxu0 %v1995_v27  ;;  %v2344_v27 = vld [vmem:[#allocation14 + $0x160] sm:$0xff] }
 0x4b4   : > { %3379 = vmatpush3.bf16.msra.mxu0 %v3378_v0  ;;  %3190 = vmatprep.mubr.msk.f32.mxu0 %vm3898_vm4, %v3899_v31  ;;  %v2342_v31 = vld [vmem:[#allocation14 + $0x150] sm:$0xff]  ;;  %v3396_v30 = vpack.c.bf16 %v2345_v28, %v2344_v27  ;;  %v3369_v0 = vpack.c.bf16 %v2329_v62, %v2328_v7 }
 0x4b5   : > { %3380 = vmatprep.subr.bf16.mxu0 %v3897_v16  ;;  %v3393_v19 = vpack.c.bf16 %v2343_v2, %v2342_v31  ;;  %v1982_v31 = vld [vmem:[#allocation12] sm:$0x7] }
 0x4b6   : > { %v2011_v2 = vrot.slane %v1982_v31, %v1994_v18  ;;  %v2003_v25 = vrot.slane %v1982_v31, %v1986_v61  ;;  %v2007_v27 = vrot.slane %v1982_v31, %v1990_v39 }
 0x4b8   : > { %3382 = vmatpush3.bf16.msra.mxu0 %v3381_v5  ;;  %v3371_v5 = vpack.c.bf16 %v2313_v3, %v2312_v1 }
 0x4b9   : > { %3383 = vmatprep.subr.bf16.mxu0 %v3897_v16 }
 0x4bc   : > { %3385 = vmatpush3.bf16.msra.mxu0 %v3384_v9  ;;  %v3373_v9 = vpack.c.bf16 %v2331_v8, %v2330_v6 }
 0x4bd   : > { %3386 = vmatprep.subr.bf16.mxu0 %v3897_v16 }
 0x4c0   : > { %3388 = vmatpush3.bf16.msra.mxu0 %v3387_v13  ;;  %v3375_v13 = vpack.c.bf16 %v2315_v12, %v2314_v11 }
 0x4c1   : > { %3389 = vmatprep.subr.bf16.mxu0 %v3897_v16 }
 0x4c4   : > { %3391 = vmatpush3.bf16.msra.mxu0 %v3390_v17 }
 0x4c5   : > { %3392 = vmatprep.subr.bf16.mxu0 %v3897_v16 }
 0x4c8   : > { %3394 = vmatpush3.bf16.msra.mxu0 %v3393_v19 }
 0x4c9   : > { %3395 = vmatprep.subr.bf16.mxu0 %v3897_v16 }
 0x4cc   : > { %3397 = vmatpush3.bf16.msra.mxu0 %v3396_v30 }
 0x4cd   : > { %3398 = vmatprep.subr.bf16.mxu0 %v3897_v16  ;;  %v3355_v16 = vpack.c.bf16 %v2305_v43, %v2304_v41 }
 0x4cf   : > { %3356 = vmatpush3.bf16.msra.mxu1 %v3355_v16 }
 0x4d0   : > { %3400 = vmatpush3.bf16.msra.mxu0 %v3399_v10  ;;  %3358 = vmatprep.subr.bf16.mxu1 %v3357_v46 }
 0x4d3   : > { %3360 = vmatpush3.bf16.msra.mxu1 %v3359_v52 }
 0x4d4   : > { %3362 = vmatprep.subr.bf16.mxu1 %v3361_v53 }
 0x4d7   : > { %3364 = vmatpush3.bf16.msra.mxu1 %v3363_v58 }
 0x4d8   : > { %3366 = vmatprep.subr.bf16.mxu1 %v3365_v59 }
 0x4db   : > { %3368 = vmatpush3.bf16.msra.mxu1 %v3367_v63 }
 0x4dc   : > { %3370 = vmatprep.subr.bf16.mxu1 %v3369_v0 }
 0x4df   : > { %3372 = vmatpush3.bf16.msra.mxu1 %v3371_v5 }
 0x4e0   : > { %3374 = vmatprep.subr.bf16.mxu1 %v3373_v9 }
 0x4e3   : > { %3376 = vmatpush3.bf16.msra.mxu1 %v3375_v13 }
 0x54a   : > { %v2955_v14 = vpop.f32.mrb[0].mxu1 }
 0x54b   : > { %v2956_v15 = vpop.f32.mrb[1].mxu1 }
 0x54c   : > { %v2957_v17 = vadd.f32 %v2956_v15, %v2955_v14 }
 0x54e   : > { %v2224_v19 = vadd.f32 %v2957_v17, %v2011_v2 }
 0x56a   : > { %v2293_v20 = vpop.f32.mrb[2].mxu1 }
 0x56b   : > { %v2294_v21 = vadd.f32 %v2293_v20, %v2224_v19  ;;  %v3157_v22 = vpop.f32.mrb[3].mxu1 }
 0x56d   : > { %v2299_v24 = vmax.f32 %v2294_v21, 0.0 }
 0x56f   : > { %3191 = vmatmul.mubr.f32.vlgmr.msra.gmra.mrb[2].mxu0 %v2299_v24 }
 0x586   : > { %v2152_v28 = vpop.f32.mrb[0].mxu0 }
 0x587   : > { %v3401_v29 = vadd.f32 %v2152_v28, %v2003_v25  ;;  %v2154_v30 = vpop.f32.mrb[1].mxu0 }
 0x588   : > { %v3402_v32 = vadd.f32 %v2154_v30, %v2007_v27 }
 0x589   : > { %v2297_v34 = vmax.f32 %v3401_v29, 0.0 }
 0x58a   : > { %v2298_v33 = vmax.f32 %v3402_v32, 0.0 }
 0x58c   : > { %2413 = vmatprep.mubr.f32.mxu1 %v2298_v33 }
 0x58d   : > { %2414 = vmatmul.mubr.f32.vlgmr.msra.gmra.mrb[4].mxu1 %v2297_v34 }
 0x642   : > { %v2485_v18 = vpop.f32.mrb[2].mxu0 }
 0x643   : > { %v3192_v35 = vpop.f32.mrb[3].mxu0 }
 0x660   : > { %v3007_v36 = vpop.f32.mrb[4].mxu1 }
 0x661   : > { %v3008_v48 = vpop.f32.mrb[5].mxu1 }
 0x662   : > { %v3009_v61 = vadd.f32 %v3008_v48, %v3007_v36 }
 0x664   : > { %v2416_v38 = vadd.f32 %v3009_v61, %v2348_v37 }
 0x666   : > { %v2486_v26 = vadd.f32 %v2485_v18, %v2416_v38 }
 0x668   : > { %v2490_v39 = vsel %vm2489_vm5, %v2486_v26, -inf }
 0x669   : > { %2491 = vmax.xlane.f32.xlu0 %v2490_v39 }
 0x6f6   : > { %v2492_v10 = vpop.xlane.xlu0 %2491 }
 0x6f7   : > { %v2493_v23 = vsub.f32 %v2486_v26, %v2492_v10 }
 0x6f9   : > { %v2494_v40 = vmul.f32 1.442695, %v2493_v23 }
 0x6fb   : > { %3597 = vpow2.f32 %v2494_v40 }
 0x705   : > { %v3598_v41 = vpop.eup %3597 }
 0x706   : > { %v2496_v42 = vsel %vm2489_vm5, %v3598_v41, 0.0 }
 0x707   : > { %2497 = vadd.xlane.f32.xlu0 %v2496_v42 }
 0x794   : > { %v2498_v43 = vpop.xlane.xlu0 %2497 }
 0x795   : > { %3599 = vlog2.f32 %v2498_v43 }
 0x79f   : > { %v3600_v44 = vpop.eup %3599 }
 0x7a0   : > { %v2500_v45 = vmul.f32 0.6931472, %v3600_v44 }
 0x7a2   : > { %v2501_v16 = vsub.f32 %v2493_v23, %v2500_v45 }
 0x7a4   : > { %2502 = vst [vmem:[#allocation15] sm:$0x1] %v2501_v16 }
 0x7a5 PF: > { %p3467_p8 = scmp.eq.s32.totalorder %s3985_s25, 2  ;;  %s3900_s23 = smov [#allocation15]  }
 0x7a6   : > { %s2510_s21 = sshll.u32 %s3900_s23, 4  ;;  %s2511_s21 = int_to_ptr.vmem [resolvable:$true] %s2510_s21 }
 0x7a7   : > { %s3801_s20 = scalar_lea.vmem %s2511_s21, 16  ;;  %s3807_s17 = scalar_lea.vmem %s2511_s21, 32 }
 0x7a8   : > { %p3802_p9 = scmp.ne.s32.totalorder %s2511_s21, %s3801_s20  ;;  %p3808_p11 = scmp.lt.s32.totalorder %s2511_s21, %s2511_s21 }
 0x7a9   : > { %p3809_p3 = scmp.lt.s32.totalorder %s3807_s17, %s3801_s20 }
 0x7aa   : > { %p3803_p12 = pnand %p3802_p9, %p3467_p8 }
 0x7ab   : > { %p3810_p7 = por %p3809_p3, %p3808_p11 }
 0x7ac   : > { %p3804_p0 = pneg %p3803_p12 }
 0x7ae   : > { %p3811_p1 = pnand %p3810_p7, %p3804_p0 }
 0x7b0   : > { %3814 = shalt.err (!%p3811_p1)
}
 0x7b1   : > { %s4623_s2 = sld [smem:[#allocation34_spill]] }
 0x7b7   : > { %s3815_s11 = scalar_lea.hbm %s4623_s2, 16 }
 0x7b8   : > { %p3816_p10 = scmp.ne.s32.totalorder %s4623_s2, %s3815_s11  ;;  %p3821_p5 = scmp.lt.u32.totalorder %s3815_s11, %s4623_s2 }
 0x7ba   : > { %p3817_p13 = pnand %p3816_p10, %p3467_p8 }
 0x7bc   : > { %p3818_p2 = pneg %p3817_p13 }
 0x7be   : > { %p3823_p6 = pnand %p3821_p5, %p3818_p2 }
 0x7c0   : > { %3826 = shalt.err (!%p3823_p6)
}
 0x7c1   : > { %3430 = dma.vmem_to_hbm [thread:$0]  (%p3467_p8), %s2511_s21, 16, %s4623_s2, [#allocation6]  }
 0x7c2   : > { %3864 = dma.done.wait (%p3467_p8), [#allocation6], 16  }
 0x7c3   : > { %3866 = vsyncadd (%p3467_p8), [#allocation6], 4294967280 }
 0x7c4 PF: > { %s4624_s24 = sld [smem:[#allocation23_spill]]  ;;  %s4625_s0 = sld [smem:[#allocation22_spill]] }
 0x7c5   : > { %s4626_s23 = sld [smem:[#allocation24_spill]]  ;;  %s4627_s21 = smov %s3873_s22 }
 0x7ca   : > { %p23_p4 = scmp.ge.s32.totalorder %s4624_s24, 5   ;;  %s4628_s22 = smov %s4625_s0 }
 0x7cc   :  { %25 = sbr.rel (!%p23_p4) target bundleno = 16 (0x10), region = 163 }
 0x7d3   :  { %2523 = vsyncpa [#allocation5], 1 }
 0x7d4   :  { %2525 = vsyncpa [#allocation5 + $0x1], 1 }
 0x7d5   :  { %2526 = vsyncpa [#allocation8], 1 }
 0x7d6   :  { %2527 = vsyncpa [#allocation13], 1 }
 0x7d7   :  { %2528 = vsyncpa [#allocation6], 1 }
 0x7d8   :  { %2530 = vsyncpa [#allocation6 + $0x1], 1 }

</bundles_post_ra>
